<compile_context>
chip_gen: v6e
topology: v6e:2x2x1
jax: 0.10.0
libtpu: 0.0.40
codegen_flags: <defaults>
</compile_context>

<pallas_src>
import jax
import jax.numpy as jnp
from jax import lax
from jax.experimental import pallas as pl
from jax.experimental.pallas import tpu as pltpu

EPS = 1e-10


def make_kernel(V, E, num_subspace, dim_subspace, num_step, tau):
    ns, ds = num_subspace, dim_subspace
    F = ns * ds
    inv_tau = 1.0 / float(tau)

    def kernel(logits_ref, gumbel_ref, A_ref, B_ref, bones_ref, eye_ref,
               ll_ref, lg_ref):
        A = A_ref[...]            # (E, V)  scatter_mean nodes->edges as matmul
        B = B_ref[...]            # (V, E)  scatter_mean edges->nodes as matmul
        bones = bones_ref[...]    # (F, F)  1.0 where columns share a subspace block
        eye = eye_ref[...]        # (F, F)  identity (diag extraction via multiply)

        # ---- fused gumbel-softmax over each ds-wide block of the lane axis ----
        # softmax is shift-invariant, so a single global row-max keeps it exact;
        # the per-block denominators come from one (V,F)@(F,F) block-sum matmul.
        y = (logits_ref[...] + gumbel_ref[...]) * inv_tau                 # (V, F)
        y = y - jnp.max(y, axis=1, keepdims=True)
        e = jnp.exp(y)
        z = jnp.dot(e, bones, preferred_element_type=jnp.float32)        # per-block sums
        X0 = e / z                                                        # (V, F)

        def half_step(M, blk_in, n_out):
            # scatter_mean over the whole fused feature axis: ONE lane-dense matmul
            blk = jnp.dot(M, blk_in, preferred_element_type=jnp.float32)  # (n_out, F)

            # local entropy: mean_n mean_s [ -sum_d p log(p+eps) ]  (fused sum over F)
            plogp = blk * jnp.log(blk + EPS)
            ll_t = -jnp.sum(jnp.sum(plogp, axis=1, keepdims=True),
                            axis=0, keepdims=True) * (1.0 / float(n_out * ns))

            # global marginal entropy of per-column means (fused sum over F)
            p = jnp.sum(blk, axis=0, keepdims=True) * (1.0 / float(n_out))    # (1, F)
            lg_ent = jnp.sum(p * jnp.log(p + EPS), axis=1,
                             keepdims=True) * (1.0 / float(ns))               # (1, 1)

            # discrimination: one block-diagonal Gram; cosine via rsqrt outer
            # scaling (column sq-norms = Gram diagonal, computed in both
            # orientations to avoid a transpose); per-block row-softmax diagonal
            # via log-sum-exp, so no in-loop divide.
            G = lax.dot_general(blk, blk, (((0,), (0,)), ((), ())),
                                preferred_element_type=jnp.float32)           # (F, F)
            gdiag_row = jnp.sum(blk * blk, axis=0, keepdims=True)             # (1, F)
            inv_row = lax.rsqrt(jnp.maximum(gdiag_row, EPS * EPS))            # (1, F)
            gdiag_col = jnp.sum(G * eye, axis=1, keepdims=True)               # (F, 1)
            inv_col = lax.rsqrt(jnp.maximum(gdiag_col, EPS * EPS))            # (F, 1)
            Cpre = G * inv_row * inv_col                                      # cosine matrix
            Zrow = jnp.sum(jnp.exp(Cpre) * bones, axis=1, keepdims=True)      # (F, 1)
            cdiag = gdiag_col * inv_col * inv_col                             # diag(Cpre)
            disc = jnp.sum(jnp.log(Zrow) - cdiag, axis=0,
                           keepdims=True) * (1.0 / float(F))                  # (1, 1)

            return blk, ll_t, lg_ent + disc

        def pair_step(carry):
            Xc, ll, lg = carry
            Yc, llt, lgt = half_step(A, Xc, E)   # X -> Y (edges)
            ll = ll + llt
            lg = lg + lgt
            Xn, llt, lgt = half_step(B, Yc, V)   # Y -> X (nodes)
            return Xn, ll + llt, lg + lgt

        carry = (X0, jnp.zeros((1, 1), jnp.float32), jnp.zeros((1, 1), jnp.float32))
        if num_step <= 4:
            # small trip count: full unroll (LLO scheduler visibility)
            for _ in range(num_step):
                carry = pair_step(carry)
        else:
            # large trip count: bound code size / vreg live ranges
            carry = lax.fori_loop(0, num_step, lambda i, c: pair_step(c), carry)

        _, ll, lg = carry
        ll_ref[...] = ll
        lg_ref[...] = lg

    return kernel


def build_normalized_incidence(V_idx, E_idx, V, E):
    """scatter_mean == matmul with row-normalized incidence matrices.

    The hypergraph topology is static across training steps, so this (and its
    XLA scatter) is built once and reused rather than per loss call.
    """
    inc = jnp.zeros((E, V), jnp.float32).at[E_idx, V_idx].add(1.0)
    A = inc / jnp.maximum(jnp.sum(inc, axis=1, keepdims=True), 1.0)        # (E, V)
    B = inc.T / jnp.maximum(jnp.sum(inc, axis=0, keepdims=True), 1.0).T    # (V, E)
    return A, B


def hypergraph_losses(node_embedding, gumbel_noise, A, B, V, E,
                      num_subspace, dim_subspace, num_step, tau=1.0):
    ns, ds = num_subspace, dim_subspace
    F = ns * ds

    # No wrapper-side reshape/transpose: the kernel consumes the fused (n, F)
    # layout directly.  Block masks are tiny static constants built host-side.
    ids = jnp.arange(F) // ds
    block_ones = (ids[:, None] == ids[None, :]).astype(jnp.float32)   # (F, F)
    eye = jnp.eye(F, dtype=jnp.float32)                               # (F, F)

    kernel = make_kernel(V, E, ns, ds, num_step, tau)
    vmem = pl.BlockSpec(memory_space=pltpu.MemorySpace.VMEM)
    # Grid-less single-TensorCore kernel (whole problem is a few KB of VMEM).
    # If batched over graphs / gumbel samples, add a leading grid axis with
    # dimension_semantics=("parallel",) to use both v7x TensorCores.
    ll, lg = pl.pallas_call(
        kernel,
        out_shape=(jax.ShapeDtypeStruct((1, 1), jnp.float32),
                   jax.ShapeDtypeStruct((1, 1), jnp.float32)),
        in_specs=[vmem] * 6,
        out_specs=(vmem, vmem),
    )(node_embedding.astype(jnp.float32), gumbel_noise.astype(jnp.float32),
      A.astype(jnp.float32), B.astype(jnp.float32), block_ones, eye)
    return ll[0, 0], lg[0, 0]


def reference_losses(node_embedding, gumbel_noise, V_idx, E_idx, V, E,
                     num_subspace, dim_subspace, num_step, tau=1.0):
    """Pure-JAX reference mirroring the PyTorch forward()."""
    ns, ds = num_subspace, dim_subspace
    inc = jnp.zeros((E, V), jnp.float32).at[E_idx, V_idx].add(1.0)
    A = inc / jnp.maximum(jnp.sum(inc, axis=1, keepdims=True), 1.0)
    B = inc.T / jnp.maximum(jnp.sum(inc, axis=0, keepdims=True), 1.0).T

    X = jax.nn.softmax((node_embedding + gumbel_noise).reshape(V, ns, ds) / tau, axis=2)
    Xj = X.reshape(V, ns * ds)

    def disc(X3):
        G = jnp.einsum('nsi,nsj->sij', X3, X3)
        n = jnp.sqrt(jnp.einsum('nsi,nsi->si', X3, X3))
        C = G / jnp.maximum(n[:, :, None] * n[:, None, :], EPS)
        C = jax.nn.softmax(C, axis=2)
        d = jnp.diagonal(C, axis1=1, axis2=2)
        return jnp.mean(-jnp.log(d))

    ll, lg = 0.0, 0.0
    for _ in range(num_step):
        Y3 = (A @ Xj).reshape(E, ns, ds)
        ll += jnp.mean(-jnp.sum(Y3 * jnp.log(Y3 + EPS), axis=2))
        pY = jnp.sum(Y3, axis=0) / E
        lg += -jnp.mean(-jnp.sum(pY * jnp.log(pY + EPS), axis=1)) + disc(Y3)
        X3 = (B @ Y3.reshape(E, ns * ds)).reshape(V, ns, ds)
        ll += jnp.mean(-jnp.sum(X3 * jnp.log(X3 + EPS), axis=2))
        pX = jnp.sum(X3, axis=0) / V
        lg += -jnp.mean(-jnp.sum(pX * jnp.log(pX + EPS), axis=1)) + disc(X3)
        Xj = X3.reshape(V, ns * ds)
    return ll, lg


if __name__ == "__main__":
    V, E = 32, 16
    num_subspace, dim_subspace = 4, 8
    num_step = 2
    num_step_gen = 3  # unused by forward()
    tau = 1.0

    key = jax.random.PRNGKey(0)
    k_emb, k_gum, k_v, k_e = jax.random.split(key, 4)

    # nn.init.normal_(node_embedding, mean=0.0, std=0.1)
    node_embedding = 0.1 * jax.random.normal(
        k_emb, (V, num_subspace * dim_subspace), jnp.float32)
    # TODO(synk): torch's gumbel_softmax draws noise from torch RNG; we sample
    # the equivalent Gumbel(0,1) noise host-side with JAX and feed it in.
    gumbel_noise = jax.random.gumbel(
        k_gum, (V, num_subspace * dim_subspace), jnp.float32)

    # hypergraph incidence pairs (every node and every edge appears at least once,
    # matching the implicit size assumptions of scatter_mean in the reference)
    M = 64
    V_idx = jnp.concatenate(
        [jnp.arange(V), jax.random.randint(k_v, (M - V,), 0, V)]).astype(jnp.int32)
    E_idx = jnp.concatenate(
        [jnp.arange(E), jnp.arange(E),
         jax.random.randint(k_e, (M - 2 * E,), 0, E)]).astype(jnp.int32)

    # Static-topology glue, hoisted out of the loss call.
    A, B = build_normalized_incidence(V_idx, E_idx, V, E)

    ll, lg = hypergraph_losses(node_embedding, gumbel_noise, A, B,
                               V, E, num_subspace, dim_subspace, num_step, tau)
    jax.block_until_ready((ll, lg))

    ll_ref, lg_ref = reference_losses(node_embedding, gumbel_noise, V_idx, E_idx,
                                      V, E, num_subspace, dim_subspace, num_step, tau)
    assert abs(float(ll) - float(ll_ref)) < 2e-3, (float(ll), float(ll_ref))
    assert abs(float(lg) - float(lg_ref)) < 2e-3, (float(lg), float(lg_ref))

    print("KERNEL_OK")
</pallas_src>

<mosaic_0001>
module attributes {stable_mosaic.version = 11 : i64} {
  func.func @kernel(%arg0: memref<32x32xf32, #tpu.memory_space<vmem>>, %arg1: memref<32x32xf32, #tpu.memory_space<vmem>>, %arg2: memref<16x32xf32, #tpu.memory_space<vmem>>, %arg3: memref<32x16xf32, #tpu.memory_space<vmem>>, %arg4: memref<32x32xf32, #tpu.memory_space<vmem>>, %arg5: memref<32x32xf32, #tpu.memory_space<vmem>>, %arg6: memref<1x1xf32, #tpu.memory_space<vmem>>, %arg7: memref<1x1xf32, #tpu.memory_space<vmem>>) attributes {dimension_semantics = [], scalar_prefetch = 0 : i64, scratch_operands = 0 : i64, tpu.core_type = #tpu.core_type<tc>} {
    %c0 = arith.constant 0 : index
    %c0_0 = arith.constant 0 : index
    %0 = vector.load %arg2[%c0, %c0_0] : memref<16x32xf32, #tpu.memory_space<vmem>>, vector<16x32xf32>
    %c0_1 = arith.constant 0 : index
    %c0_2 = arith.constant 0 : index
    %1 = vector.load %arg3[%c0_1, %c0_2] : memref<32x16xf32, #tpu.memory_space<vmem>>, vector<32x16xf32>
    %c0_3 = arith.constant 0 : index
    %c0_4 = arith.constant 0 : index
    %2 = vector.load %arg4[%c0_3, %c0_4] : memref<32x32xf32, #tpu.memory_space<vmem>>, vector<32x32xf32>
    %c0_5 = arith.constant 0 : index
    %c0_6 = arith.constant 0 : index
    %3 = vector.load %arg5[%c0_5, %c0_6] : memref<32x32xf32, #tpu.memory_space<vmem>>, vector<32x32xf32>
    %c0_7 = arith.constant 0 : index
    %c0_8 = arith.constant 0 : index
    %4 = vector.load %arg0[%c0_7, %c0_8] : memref<32x32xf32, #tpu.memory_space<vmem>>, vector<32x32xf32>
    %c0_9 = arith.constant 0 : index
    %c0_10 = arith.constant 0 : index
    %5 = vector.load %arg1[%c0_9, %c0_10] : memref<32x32xf32, #tpu.memory_space<vmem>>, vector<32x32xf32>
    %6 = arith.addf %4, %5 : vector<32x32xf32>
    %cst = arith.constant 1.000000e+00 : f32
    %7 = vector.broadcast %cst : f32 to vector<32x32xf32>
    %8 = arith.mulf %6, %7 : vector<32x32xf32>
    %cst_11 = arith.constant dense<0xFF800000> : vector<32xf32>
    %9 = vector.multi_reduction <maximumf>, %8, %cst_11 [1] : vector<32x32xf32> to vector<32xf32>
    %10 = vector.shape_cast %9 : vector<32xf32> to vector<32x1xf32>
    %11 = vector.broadcast %10 : vector<32x1xf32> to vector<32x32xf32>
    %12 = arith.subf %8, %11 : vector<32x32xf32>
    %13 = math.exp %12 : vector<32x32xf32>
    %cst_12 = arith.constant dense<0.000000e+00> : vector<32x32xf32>
    %14 = tpu.matmul %13, %2, %cst_12 {dimension_numbers = #tpu.dot_dimension_numbers<[1], [0], [0], [1], [0, 0, 1, 1], [], []>} : vector<32x32xf32>, vector<32x32xf32>, vector<32x32xf32> -> vector<32x32xf32>
    %15 = arith.divf %13, %14 : vector<32x32xf32>
    %cst_13 = arith.constant 0.000000e+00 : f32
    %16 = vector.broadcast %cst_13 : f32 to vector<1x1xf32>
    %cst_14 = arith.constant 0.000000e+00 : f32
    %17 = vector.broadcast %cst_14 : f32 to vector<1x1xf32>
    %cst_15 = arith.constant dense<0.000000e+00> : vector<16x32xf32>
    %18 = tpu.matmul %0, %15, %cst_15 {dimension_numbers = #tpu.dot_dimension_numbers<[1], [0], [0], [1], [0, 0, 1, 1], [], []>} : vector<16x32xf32>, vector<32x32xf32>, vector<16x32xf32> -> vector<16x32xf32>
    %cst_16 = arith.constant 1.000000e-10 : f32
    %19 = vector.broadcast %cst_16 : f32 to vector<16x32xf32>
    %20 = arith.addf %18, %19 : vector<16x32xf32>
    %21 = math.log %20 : vector<16x32xf32>
    %22 = arith.mulf %18, %21 : vector<16x32xf32>
    %cst_17 = arith.constant dense<0.000000e+00> : vector<16xf32>
    %23 = vector.multi_reduction <add>, %22, %cst_17 [1] : vector<16x32xf32> to vector<16xf32>
    %24 = vector.shape_cast %23 : vector<16xf32> to vector<16x1xf32>
    %cst_18 = arith.constant dense<0.000000e+00> : vector<1xf32>
    %25 = vector.multi_reduction <add>, %24, %cst_18 [0] : vector<16x1xf32> to vector<1xf32>
    %26 = vector.shape_cast %25 : vector<1xf32> to vector<1x1xf32>
    %cst_19 = arith.constant 0.000000e+00 : f32
    %27 = vector.broadcast %cst_19 : f32 to vector<1x1xf32>
    %28 = arith.subf %27, %26 : vector<1x1xf32>
    %cst_20 = arith.constant 1.562500e-02 : f32
    %29 = vector.broadcast %cst_20 : f32 to vector<1x1xf32>
    %30 = arith.mulf %28, %29 : vector<1x1xf32>
    %cst_21 = arith.constant dense<0.000000e+00> : vector<32xf32>
    %31 = vector.multi_reduction <add>, %18, %cst_21 [0] : vector<16x32xf32> to vector<32xf32>
    %32 = vector.shape_cast %31 : vector<32xf32> to vector<1x32xf32>
    %cst_22 = arith.constant 6.250000e-02 : f32
    %33 = vector.broadcast %cst_22 : f32 to vector<1x32xf32>
    %34 = arith.mulf %32, %33 : vector<1x32xf32>
    %cst_23 = arith.constant 1.000000e-10 : f32
    %35 = vector.broadcast %cst_23 : f32 to vector<1x32xf32>
    %36 = arith.addf %34, %35 : vector<1x32xf32>
    %37 = math.log %36 : vector<1x32xf32>
    %38 = arith.mulf %34, %37 : vector<1x32xf32>
    %cst_24 = arith.constant dense<0.000000e+00> : vector<1xf32>
    %39 = vector.multi_reduction <add>, %38, %cst_24 [1] : vector<1x32xf32> to vector<1xf32>
    %40 = vector.shape_cast %39 : vector<1xf32> to vector<1x1xf32>
    %cst_25 = arith.constant 2.500000e-01 : f32
    %41 = vector.broadcast %cst_25 : f32 to vector<1x1xf32>
    %42 = arith.mulf %40, %41 : vector<1x1xf32>
    %cst_26 = arith.constant dense<0.000000e+00> : vector<32x32xf32>
    %43 = tpu.matmul %18, %18, %cst_26 {dimension_numbers = #tpu.dot_dimension_numbers<[0], [0], [1], [1], [0, 1, 1, 1], [], []>} : vector<16x32xf32>, vector<16x32xf32>, vector<32x32xf32> -> vector<32x32xf32>
    %44 = arith.mulf %18, %18 : vector<16x32xf32>
    %cst_27 = arith.constant dense<0.000000e+00> : vector<32xf32>
    %45 = vector.multi_reduction <add>, %44, %cst_27 [0] : vector<16x32xf32> to vector<32xf32>
    %46 = vector.shape_cast %45 : vector<32xf32> to vector<1x32xf32>
    %cst_28 = arith.constant 9.99999968E-21 : f32
    %47 = vector.broadcast %cst_28 : f32 to vector<1x32xf32>
    %48 = arith.maximumf %46, %47 : vector<1x32xf32>
    %49 = math.rsqrt %48 : vector<1x32xf32>
    %50 = arith.mulf %43, %3 : vector<32x32xf32>
    %cst_29 = arith.constant dense<0.000000e+00> : vector<32xf32>
    %51 = vector.multi_reduction <add>, %50, %cst_29 [1] : vector<32x32xf32> to vector<32xf32>
    %52 = vector.shape_cast %51 : vector<32xf32> to vector<32x1xf32>
    %cst_30 = arith.constant 9.99999968E-21 : f32
    %53 = vector.broadcast %cst_30 : f32 to vector<32x1xf32>
    %54 = arith.maximumf %52, %53 : vector<32x1xf32>
    %55 = math.rsqrt %54 : vector<32x1xf32>
    %56 = vector.broadcast %49 : vector<1x32xf32> to vector<32x32xf32>
    %57 = arith.mulf %43, %56 : vector<32x32xf32>
    %58 = vector.broadcast %55 : vector<32x1xf32> to vector<32x32xf32>
    %59 = arith.mulf %57, %58 : vector<32x32xf32>
    %60 = math.exp %59 : vector<32x32xf32>
    %61 = arith.mulf %60, %2 : vector<32x32xf32>
    %cst_31 = arith.constant dense<0.000000e+00> : vector<32xf32>
    %62 = vector.multi_reduction <add>, %61, %cst_31 [1] : vector<32x32xf32> to vector<32xf32>
    %63 = vector.shape_cast %62 : vector<32xf32> to vector<32x1xf32>
    %64 = arith.mulf %52, %55 : vector<32x1xf32>
    %65 = arith.mulf %64, %55 : vector<32x1xf32>
    %66 = math.log %63 : vector<32x1xf32>
    %67 = arith.subf %66, %65 : vector<32x1xf32>
    %cst_32 = arith.constant dense<0.000000e+00> : vector<1xf32>
    %68 = vector.multi_reduction <add>, %67, %cst_32 [0] : vector<32x1xf32> to vector<1xf32>
    %69 = vector.shape_cast %68 : vector<1xf32> to vector<1x1xf32>
    %cst_33 = arith.constant 3.125000e-02 : f32
    %70 = vector.broadcast %cst_33 : f32 to vector<1x1xf32>
    %71 = arith.mulf %69, %70 : vector<1x1xf32>
    %72 = arith.addf %42, %71 : vector<1x1xf32>
    %73 = arith.addf %16, %30 : vector<1x1xf32>
    %74 = arith.addf %17, %72 : vector<1x1xf32>
    %cst_34 = arith.constant dense<0.000000e+00> : vector<32x32xf32>
    %75 = tpu.matmul %1, %18, %cst_34 {dimension_numbers = #tpu.dot_dimension_numbers<[1], [0], [0], [1], [0, 0, 1, 1], [], []>} : vector<32x16xf32>, vector<16x32xf32>, vector<32x32xf32> -> vector<32x32xf32>
    %cst_35 = arith.constant 1.000000e-10 : f32
    %76 = vector.broadcast %cst_35 : f32 to vector<32x32xf32>
    %77 = arith.addf %75, %76 : vector<32x32xf32>
    %78 = math.log %77 : vector<32x32xf32>
    %79 = arith.mulf %75, %78 : vector<32x32xf32>
    %cst_36 = arith.constant dense<0.000000e+00> : vector<32xf32>
    %80 = vector.multi_reduction <add>, %79, %cst_36 [1] : vector<32x32xf32> to vector<32xf32>
    %81 = vector.shape_cast %80 : vector<32xf32> to vector<32x1xf32>
    %cst_37 = arith.constant dense<0.000000e+00> : vector<1xf32>
    %82 = vector.multi_reduction <add>, %81, %cst_37 [0] : vector<32x1xf32> to vector<1xf32>
    %83 = vector.shape_cast %82 : vector<1xf32> to vector<1x1xf32>
    %cst_38 = arith.constant 0.000000e+00 : f32
    %84 = vector.broadcast %cst_38 : f32 to vector<1x1xf32>
    %85 = arith.subf %84, %83 : vector<1x1xf32>
    %cst_39 = arith.constant 7.812500e-03 : f32
    %86 = vector.broadcast %cst_39 : f32 to vector<1x1xf32>
    %87 = arith.mulf %85, %86 : vector<1x1xf32>
    %cst_40 = arith.constant dense<0.000000e+00> : vector<32xf32>
    %88 = vector.multi_reduction <add>, %75, %cst_40 [0] : vector<32x32xf32> to vector<32xf32>
    %89 = vector.shape_cast %88 : vector<32xf32> to vector<1x32xf32>
    %cst_41 = arith.constant 3.125000e-02 : f32
    %90 = vector.broadcast %cst_41 : f32 to vector<1x32xf32>
    %91 = arith.mulf %89, %90 : vector<1x32xf32>
    %cst_42 = arith.constant 1.000000e-10 : f32
    %92 = vector.broadcast %cst_42 : f32 to vector<1x32xf32>
    %93 = arith.addf %91, %92 : vector<1x32xf32>
    %94 = math.log %93 : vector<1x32xf32>
    %95 = arith.mulf %91, %94 : vector<1x32xf32>
    %cst_43 = arith.constant dense<0.000000e+00> : vector<1xf32>
    %96 = vector.multi_reduction <add>, %95, %cst_43 [1] : vector<1x32xf32> to vector<1xf32>
    %97 = vector.shape_cast %96 : vector<1xf32> to vector<1x1xf32>
    %cst_44 = arith.constant 2.500000e-01 : f32
    %98 = vector.broadcast %cst_44 : f32 to vector<1x1xf32>
    %99 = arith.mulf %97, %98 : vector<1x1xf32>
    %cst_45 = arith.constant dense<0.000000e+00> : vector<32x32xf32>
    %100 = tpu.matmul %75, %75, %cst_45 {dimension_numbers = #tpu.dot_dimension_numbers<[0], [0], [1], [1], [0, 1, 1, 1], [], []>} : vector<32x32xf32>, vector<32x32xf32>, vector<32x32xf32> -> vector<32x32xf32>
    %101 = arith.mulf %75, %75 : vector<32x32xf32>
    %cst_46 = arith.constant dense<0.000000e+00> : vector<32xf32>
    %102 = vector.multi_reduction <add>, %101, %cst_46 [0] : vector<32x32xf32> to vector<32xf32>
    %103 = vector.shape_cast %102 : vector<32xf32> to vector<1x32xf32>
    %cst_47 = arith.constant 9.99999968E-21 : f32
    %104 = vector.broadcast %cst_47 : f32 to vector<1x32xf32>
    %105 = arith.maximumf %103, %104 : vector<1x32xf32>
    %106 = math.rsqrt %105 : vector<1x32xf32>
    %107 = arith.mulf %100, %3 : vector<32x32xf32>
    %cst_48 = arith.constant dense<0.000000e+00> : vector<32xf32>
    %108 = vector.multi_reduction <add>, %107, %cst_48 [1] : vector<32x32xf32> to vector<32xf32>
    %109 = vector.shape_cast %108 : vector<32xf32> to vector<32x1xf32>
    %cst_49 = arith.constant 9.99999968E-21 : f32
    %110 = vector.broadcast %cst_49 : f32 to vector<32x1xf32>
    %111 = arith.maximumf %109, %110 : vector<32x1xf32>
    %112 = math.rsqrt %111 : vector<32x1xf32>
    %113 = vector.broadcast %106 : vector<1x32xf32> to vector<32x32xf32>
    %114 = arith.mulf %100, %113 : vector<32x32xf32>
    %115 = vector.broadcast %112 : vector<32x1xf32> to vector<32x32xf32>
    %116 = arith.mulf %114, %115 : vector<32x32xf32>
    %117 = math.exp %116 : vector<32x32xf32>
    %118 = arith.mulf %117, %2 : vector<32x32xf32>
    %cst_50 = arith.constant dense<0.000000e+00> : vector<32xf32>
    %119 = vector.multi_reduction <add>, %118, %cst_50 [1] : vector<32x32xf32> to vector<32xf32>
    %120 = vector.shape_cast %119 : vector<32xf32> to vector<32x1xf32>
    %121 = arith.mulf %109, %112 : vector<32x1xf32>
    %122 = arith.mulf %121, %112 : vector<32x1xf32>
    %123 = math.log %120 : vector<32x1xf32>
    %124 = arith.subf %123, %122 : vector<32x1xf32>
    %cst_51 = arith.constant dense<0.000000e+00> : vector<1xf32>
    %125 = vector.multi_reduction <add>, %124, %cst_51 [0] : vector<32x1xf32> to vector<1xf32>
    %126 = vector.shape_cast %125 : vector<1xf32> to vector<1x1xf32>
    %cst_52 = arith.constant 3.125000e-02 : f32
    %127 = vector.broadcast %cst_52 : f32 to vector<1x1xf32>
    %128 = arith.mulf %126, %127 : vector<1x1xf32>
    %129 = arith.addf %99, %128 : vector<1x1xf32>
    %130 = arith.addf %73, %87 : vector<1x1xf32>
    %131 = arith.addf %74, %129 : vector<1x1xf32>
    %cst_53 = arith.constant dense<0.000000e+00> : vector<16x32xf32>
    %132 = tpu.matmul %0, %75, %cst_53 {dimension_numbers = #tpu.dot_dimension_numbers<[1], [0], [0], [1], [0, 0, 1, 1], [], []>} : vector<16x32xf32>, vector<32x32xf32>, vector<16x32xf32> -> vector<16x32xf32>
    %cst_54 = arith.constant 1.000000e-10 : f32
    %133 = vector.broadcast %cst_54 : f32 to vector<16x32xf32>
    %134 = arith.addf %132, %133 : vector<16x32xf32>
    %135 = math.log %134 : vector<16x32xf32>
    %136 = arith.mulf %132, %135 : vector<16x32xf32>
    %cst_55 = arith.constant dense<0.000000e+00> : vector<16xf32>
    %137 = vector.multi_reduction <add>, %136, %cst_55 [1] : vector<16x32xf32> to vector<16xf32>
    %138 = vector.shape_cast %137 : vector<16xf32> to vector<16x1xf32>
    %cst_56 = arith.constant dense<0.000000e+00> : vector<1xf32>
    %139 = vector.multi_reduction <add>, %138, %cst_56 [0] : vector<16x1xf32> to vector<1xf32>
    %140 = vector.shape_cast %139 : vector<1xf32> to vector<1x1xf32>
    %cst_57 = arith.constant 0.000000e+00 : f32
    %141 = vector.broadcast %cst_57 : f32 to vector<1x1xf32>
    %142 = arith.subf %141, %140 : vector<1x1xf32>
    %cst_58 = arith.constant 1.562500e-02 : f32
    %143 = vector.broadcast %cst_58 : f32 to vector<1x1xf32>
    %144 = arith.mulf %142, %143 : vector<1x1xf32>
    %cst_59 = arith.constant dense<0.000000e+00> : vector<32xf32>
    %145 = vector.multi_reduction <add>, %132, %cst_59 [0] : vector<16x32xf32> to vector<32xf32>
    %146 = vector.shape_cast %145 : vector<32xf32> to vector<1x32xf32>
    %cst_60 = arith.constant 6.250000e-02 : f32
    %147 = vector.broadcast %cst_60 : f32 to vector<1x32xf32>
    %148 = arith.mulf %146, %147 : vector<1x32xf32>
    %cst_61 = arith.constant 1.000000e-10 : f32
    %149 = vector.broadcast %cst_61 : f32 to vector<1x32xf32>
    %150 = arith.addf %148, %149 : vector<1x32xf32>
    %151 = math.log %150 : vector<1x32xf32>
    %152 = arith.mulf %148, %151 : vector<1x32xf32>
    %cst_62 = arith.constant dense<0.000000e+00> : vector<1xf32>
    %153 = vector.multi_reduction <add>, %152, %cst_62 [1] : vector<1x32xf32> to vector<1xf32>
    %154 = vector.shape_cast %153 : vector<1xf32> to vector<1x1xf32>
    %cst_63 = arith.constant 2.500000e-01 : f32
    %155 = vector.broadcast %cst_63 : f32 to vector<1x1xf32>
    %156 = arith.mulf %154, %155 : vector<1x1xf32>
    %cst_64 = arith.constant dense<0.000000e+00> : vector<32x32xf32>
    %157 = tpu.matmul %132, %132, %cst_64 {dimension_numbers = #tpu.dot_dimension_numbers<[0], [0], [1], [1], [0, 1, 1, 1], [], []>} : vector<16x32xf32>, vector<16x32xf32>, vector<32x32xf32> -> vector<32x32xf32>
    %158 = arith.mulf %132, %132 : vector<16x32xf32>
    %cst_65 = arith.constant dense<0.000000e+00> : vector<32xf32>
    %159 = vector.multi_reduction <add>, %158, %cst_65 [0] : vector<16x32xf32> to vector<32xf32>
    %160 = vector.shape_cast %159 : vector<32xf32> to vector<1x32xf32>
    %cst_66 = arith.constant 9.99999968E-21 : f32
    %161 = vector.broadcast %cst_66 : f32 to vector<1x32xf32>
    %162 = arith.maximumf %160, %161 : vector<1x32xf32>
    %163 = math.rsqrt %162 : vector<1x32xf32>
    %164 = arith.mulf %157, %3 : vector<32x32xf32>
    %cst_67 = arith.constant dense<0.000000e+00> : vector<32xf32>
    %165 = vector.multi_reduction <add>, %164, %cst_67 [1] : vector<32x32xf32> to vector<32xf32>
    %166 = vector.shape_cast %165 : vector<32xf32> to vector<32x1xf32>
    %cst_68 = arith.constant 9.99999968E-21 : f32
    %167 = vector.broadcast %cst_68 : f32 to vector<32x1xf32>
    %168 = arith.maximumf %166, %167 : vector<32x1xf32>
    %169 = math.rsqrt %168 : vector<32x1xf32>
    %170 = vector.broadcast %163 : vector<1x32xf32> to vector<32x32xf32>
    %171 = arith.mulf %157, %170 : vector<32x32xf32>
    %172 = vector.broadcast %169 : vector<32x1xf32> to vector<32x32xf32>
    %173 = arith.mulf %171, %172 : vector<32x32xf32>
    %174 = math.exp %173 : vector<32x32xf32>
    %175 = arith.mulf %174, %2 : vector<32x32xf32>
    %cst_69 = arith.constant dense<0.000000e+00> : vector<32xf32>
    %176 = vector.multi_reduction <add>, %175, %cst_69 [1] : vector<32x32xf32> to vector<32xf32>
    %177 = vector.shape_cast %176 : vector<32xf32> to vector<32x1xf32>
    %178 = arith.mulf %166, %169 : vector<32x1xf32>
    %179 = arith.mulf %178, %169 : vector<32x1xf32>
    %180 = math.log %177 : vector<32x1xf32>
    %181 = arith.subf %180, %179 : vector<32x1xf32>
    %cst_70 = arith.constant dense<0.000000e+00> : vector<1xf32>
    %182 = vector.multi_reduction <add>, %181, %cst_70 [0] : vector<32x1xf32> to vector<1xf32>
    %183 = vector.shape_cast %182 : vector<1xf32> to vector<1x1xf32>
    %cst_71 = arith.constant 3.125000e-02 : f32
    %184 = vector.broadcast %cst_71 : f32 to vector<1x1xf32>
    %185 = arith.mulf %183, %184 : vector<1x1xf32>
    %186 = arith.addf %156, %185 : vector<1x1xf32>
    %187 = arith.addf %130, %144 : vector<1x1xf32>
    %188 = arith.addf %131, %186 : vector<1x1xf32>
    %cst_72 = arith.constant dense<0.000000e+00> : vector<32x32xf32>
    %189 = tpu.matmul %1, %132, %cst_72 {dimension_numbers = #tpu.dot_dimension_numbers<[1], [0], [0], [1], [0, 0, 1, 1], [], []>} : vector<32x16xf32>, vector<16x32xf32>, vector<32x32xf32> -> vector<32x32xf32>
    %cst_73 = arith.constant 1.000000e-10 : f32
    %190 = vector.broadcast %cst_73 : f32 to vector<32x32xf32>
    %191 = arith.addf %189, %190 : vector<32x32xf32>
    %192 = math.log %191 : vector<32x32xf32>
    %193 = arith.mulf %189, %192 : vector<32x32xf32>
    %cst_74 = arith.constant dense<0.000000e+00> : vector<32xf32>
    %194 = vector.multi_reduction <add>, %193, %cst_74 [1] : vector<32x32xf32> to vector<32xf32>
    %195 = vector.shape_cast %194 : vector<32xf32> to vector<32x1xf32>
    %cst_75 = arith.constant dense<0.000000e+00> : vector<1xf32>
    %196 = vector.multi_reduction <add>, %195, %cst_75 [0] : vector<32x1xf32> to vector<1xf32>
    %197 = vector.shape_cast %196 : vector<1xf32> to vector<1x1xf32>
    %cst_76 = arith.constant 0.000000e+00 : f32
    %198 = vector.broadcast %cst_76 : f32 to vector<1x1xf32>
    %199 = arith.subf %198, %197 : vector<1x1xf32>
    %cst_77 = arith.constant 7.812500e-03 : f32
    %200 = vector.broadcast %cst_77 : f32 to vector<1x1xf32>
    %201 = arith.mulf %199, %200 : vector<1x1xf32>
    %cst_78 = arith.constant dense<0.000000e+00> : vector<32xf32>
    %202 = vector.multi_reduction <add>, %189, %cst_78 [0] : vector<32x32xf32> to vector<32xf32>
    %203 = vector.shape_cast %202 : vector<32xf32> to vector<1x32xf32>
    %cst_79 = arith.constant 3.125000e-02 : f32
    %204 = vector.broadcast %cst_79 : f32 to vector<1x32xf32>
    %205 = arith.mulf %203, %204 : vector<1x32xf32>
    %cst_80 = arith.constant 1.000000e-10 : f32
    %206 = vector.broadcast %cst_80 : f32 to vector<1x32xf32>
    %207 = arith.addf %205, %206 : vector<1x32xf32>
    %208 = math.log %207 : vector<1x32xf32>
    %209 = arith.mulf %205, %208 : vector<1x32xf32>
    %cst_81 = arith.constant dense<0.000000e+00> : vector<1xf32>
    %210 = vector.multi_reduction <add>, %209, %cst_81 [1] : vector<1x32xf32> to vector<1xf32>
    %211 = vector.shape_cast %210 : vector<1xf32> to vector<1x1xf32>
    %cst_82 = arith.constant 2.500000e-01 : f32
    %212 = vector.broadcast %cst_82 : f32 to vector<1x1xf32>
    %213 = arith.mulf %211, %212 : vector<1x1xf32>
    %cst_83 = arith.constant dense<0.000000e+00> : vector<32x32xf32>
    %214 = tpu.matmul %189, %189, %cst_83 {dimension_numbers = #tpu.dot_dimension_numbers<[0], [0], [1], [1], [0, 1, 1, 1], [], []>} : vector<32x32xf32>, vector<32x32xf32>, vector<32x32xf32> -> vector<32x32xf32>
    %215 = arith.mulf %189, %189 : vector<32x32xf32>
    %cst_84 = arith.constant dense<0.000000e+00> : vector<32xf32>
    %216 = vector.multi_reduction <add>, %215, %cst_84 [0] : vector<32x32xf32> to vector<32xf32>
    %217 = vector.shape_cast %216 : vector<32xf32> to vector<1x32xf32>
    %cst_85 = arith.constant 9.99999968E-21 : f32
    %218 = vector.broadcast %cst_85 : f32 to vector<1x32xf32>
    %219 = arith.maximumf %217, %218 : vector<1x32xf32>
    %220 = math.rsqrt %219 : vector<1x32xf32>
    %221 = arith.mulf %214, %3 : vector<32x32xf32>
    %cst_86 = arith.constant dense<0.000000e+00> : vector<32xf32>
    %222 = vector.multi_reduction <add>, %221, %cst_86 [1] : vector<32x32xf32> to vector<32xf32>
    %223 = vector.shape_cast %222 : vector<32xf32> to vector<32x1xf32>
    %cst_87 = arith.constant 9.99999968E-21 : f32
    %224 = vector.broadcast %cst_87 : f32 to vector<32x1xf32>
    %225 = arith.maximumf %223, %224 : vector<32x1xf32>
    %226 = math.rsqrt %225 : vector<32x1xf32>
    %227 = vector.broadcast %220 : vector<1x32xf32> to vector<32x32xf32>
    %228 = arith.mulf %214, %227 : vector<32x32xf32>
    %229 = vector.broadcast %226 : vector<32x1xf32> to vector<32x32xf32>
    %230 = arith.mulf %228, %229 : vector<32x32xf32>
    %231 = math.exp %230 : vector<32x32xf32>
    %232 = arith.mulf %231, %2 : vector<32x32xf32>
    %cst_88 = arith.constant dense<0.000000e+00> : vector<32xf32>
    %233 = vector.multi_reduction <add>, %232, %cst_88 [1] : vector<32x32xf32> to vector<32xf32>
    %234 = vector.shape_cast %233 : vector<32xf32> to vector<32x1xf32>
    %235 = arith.mulf %223, %226 : vector<32x1xf32>
    %236 = arith.mulf %235, %226 : vector<32x1xf32>
    %237 = math.log %234 : vector<32x1xf32>
    %238 = arith.subf %237, %236 : vector<32x1xf32>
    %cst_89 = arith.constant dense<0.000000e+00> : vector<1xf32>
    %239 = vector.multi_reduction <add>, %238, %cst_89 [0] : vector<32x1xf32> to vector<1xf32>
    %240 = vector.shape_cast %239 : vector<1xf32> to vector<1x1xf32>
    %cst_90 = arith.constant 3.125000e-02 : f32
    %241 = vector.broadcast %cst_90 : f32 to vector<1x1xf32>
    %242 = arith.mulf %240, %241 : vector<1x1xf32>
    %243 = arith.addf %213, %242 : vector<1x1xf32>
    %244 = arith.addf %187, %201 : vector<1x1xf32>
    %245 = arith.addf %188, %243 : vector<1x1xf32>
    %c0_91 = arith.constant 0 : index
    %c0_92 = arith.constant 0 : index
    %246 = vector.load %arg6[%c0_91, %c0_92] : memref<1x1xf32, #tpu.memory_space<vmem>>, vector<1x1xf32>
    tpu.vector_store %arg6[%c0_91, %c0_92], %244 {strides = array<i32>} : memref<1x1xf32, #tpu.memory_space<vmem>>, vector<1x1xf32>,
    %c0_93 = arith.constant 0 : index
    %c0_94 = arith.constant 0 : index
    %247 = vector.load %arg7[%c0_93, %c0_94] : memref<1x1xf32, #tpu.memory_space<vmem>>, vector<1x1xf32>
    tpu.vector_store %arg7[%c0_93, %c0_94], %245 {strides = array<i32>} : memref<1x1xf32, #tpu.memory_space<vmem>>, vector<1x1xf32>,
    return
  }
}

</mosaic_0001>

<bundles_post_ra>
// kernel: tpu_custom_call.1
= control target key start
LH: loop header
LB: loop body
LE: loop exit
PB: predicated region body
PF: predicated region fallthrough
CT: control target
= control target key end

     0   :  { %13 = vsyncpa [#allocation3], 0  ;;  %s2856_s0 = inlined_call_operand.vmem [shape: f32[32,32], index: 0, kind: input, shape index: {}]   ;;  %s2857_s1 = inlined_call_operand.hbm [shape: f32[32,32], index: 1, kind: input, shape index: {}]   ;;  %s2858_s2 = inlined_call_operand.vmem [shape: f32[16,32], index: 2, kind: input, shape index: {}]   ;;  %s2859_s3 = inlined_call_operand.vmem [shape: f32[32,16], index: 3, kind: input, shape index: {}]   ;;  %s2860_s4 = inlined_call_operand.hbm [shape: f32[32,32], index: 4, kind: input, shape index: {}]   ;;  %s2861_s5 = inlined_call_operand.hbm [shape: f32[32,32], index: 5, kind: input, shape index: {}]   ;;  %s2862_s6 = inlined_call_operand.hbm [shape: f32[1,1], index: 6, kind: output, shape index: {0}]   ;;  %s2863_s7 = inlined_call_operand.hbm [shape: f32[1,1], index: 7, kind: output, shape index: {1}]  }
   0x1   :  { %14 = vsyncpa [#allocation6], 0 }
   0x2   :  { %15 = vsyncpa [#allocation4], 0 }
   0x3   :  { %16 = vsyncpa [#allocation10], 0  ;;  %s2204_s24 = smov [#allocation5]   ;;  %s2205_s26 = smov [#allocation2]  }
   0x4   :  { %s40_s25 = sshll.u32 %s2204_s24, 4  ;;  %s24_s27 = sshll.u32 %s2205_s26, 4  ;;  %s41_s25 = int_to_ptr.vmem [resolvable:$true] %s40_s25  ;;  %s25_s27 = int_to_ptr.vmem [resolvable:$true] %s24_s27 }
   0x5   :  { %s2104_s28 = scalar_lea.vmem %s41_s25, 512  ;;  %p2109_p1 = scmp.lt.s32.totalorder %s41_s25, %s41_s25 }
   0x6   :  { %p2105_p0 = scmp.ne.s32.totalorder %s41_s25, %s2104_s28  ;;  %p2110_p2 = scmp.lt.s32.totalorder %s2104_s28, %s2104_s28 }
   0x8   :  { %p2111_p3 = por %p2110_p2, %p2109_p1 }
   0xa   :  { %p2112_p4 = pnand %p2111_p3, %p2105_p0 }
   0xc   :  { %2115 = shalt.err (!%p2112_p4)
}
   0xd   :  { %s2206_s29 = smov 128   ;;  %s2207_s30 = smov 8  }
   0xe   :  { %46 = dma.hbm_to_vmem [thread:$0]  %s2860_s4, 512, %s41_s25, [#allocation6], %s2206_s29, %s2206_s29, %s2207_s30  }
   0xf   :  { %s2124_s10 = scalar_lea.vmem %s25_s27, 512  ;;  %p2129_p6 = scmp.lt.s32.totalorder %s25_s27, %s25_s27 }
  0x10   :  { %p2125_p5 = scmp.ne.s32.totalorder %s25_s27, %s2124_s10  ;;  %p2130_p7 = scmp.lt.s32.totalorder %s2124_s10, %s2124_s10 }
  0x12   :  { %p2131_p8 = por %p2130_p7, %p2129_p6 }
  0x14   :  { %p2132_p9 = pnand %p2131_p8, %p2125_p5 }
  0x16   :  { %2135 = shalt.err (!%p2132_p9)
}
  0x17   :  { %30 = dma.hbm_to_vmem [thread:$0]  %s2857_s1, 512, %s25_s27, [#allocation3], %s2206_s29, %s2206_s29, %s2207_s30  }
  0x18   :  { %s2208_s13 = smov [#allocation7]  }
  0x19   :  { %s52_s14 = sshll.u32 %s2208_s13, 4  ;;  %s53_s14 = int_to_ptr.vmem [resolvable:$true] %s52_s14 }
  0x1a   :  { %s2144_s15 = scalar_lea.vmem %s53_s14, 512  ;;  %p2149_p11 = scmp.lt.s32.totalorder %s53_s14, %s53_s14 }
  0x1b   :  { %p2145_p10 = scmp.ne.s32.totalorder %s53_s14, %s2144_s15  ;;  %p2150_p12 = scmp.lt.s32.totalorder %s2144_s15, %s2144_s15 }
  0x1d   :  { %p2151_p13 = por %p2150_p12, %p2149_p11 }
  0x1f   :  { %p2152_p0 = pnand %p2151_p13, %p2145_p10 }
  0x21   :  { %2155 = shalt.err (!%p2152_p0)
}
  0x22   :  { %58 = dma.hbm_to_vmem [thread:$0]  %s2861_s5, 512, %s53_s14, [#allocation6], %s2206_s29, %s2206_s29, %s2207_s30  }
  0x23   :  { %2196 = dma.done.wait [#allocation3], 512  }
  0x24   :  { %2197 = vsyncadd [#allocation3], 4294966784 }
  0x25   :  { %2198 = dma.done.wait [#allocation6], 1024  }
  0x26   :  { %2199 = vsyncadd [#allocation6], 4294966272  ;;  %v82_v0 = vld [vmem:[%s2856_s0] sm:$0xff]  ;;  %vm94_vm0 = vcmask 261120   ;;  %v84_v2 = vld [vmem:[%s2856_s0 + $0x10] sm:$0xff]  ;;  %vm378_vm1 = vcmask 130048  }
  0x27   :  { %v86_v1 = vld [vmem:[#allocation2] sm:$0xff]  ;;  %v88_v4 = vld [vmem:[#allocation2 + $0x10] sm:$0xff]  ;;  %v83_v5 = vld [vmem:[%s2856_s0 + $0x8] sm:$0xff]  ;;  %vm1703_vm2 = vcmask 0  }
  0x28   :  { %v90_v3 = vadd.f32 %v86_v1, %v82_v0  ;;  %v87_v6 = vld [vmem:[#allocation2 + $0x8] sm:$0xff]  ;;  %v92_v7 = vadd.f32 %v88_v4, %v84_v2  ;;  %v85_v9 = vld [vmem:[%s2856_s0 + $0x18] sm:$0xff]  ;;  %v2278_v17 = vld [vmem:[#allocation5 + $0x10] sm:$0xff] }
  0x29   :  { %v91_v8 = vadd.f32 %v87_v6, %v83_v5  ;;  %v89_v10 = vld [vmem:[#allocation2 + $0x18] sm:$0xff]  ;;  %v2282_v18 = vld [vmem:[#allocation5 + $0x8] sm:$0xff]  ;;  %v2288_v19 = vld [vmem:[#allocation5] sm:$0xff] }
  0x2a   :  { %v95_v11 = vsel %vm94_vm0, %v90_v3, -inf  ;;  %v93_v12 = vadd.f32 %v89_v10, %v85_v9  ;;  %v101_v13 = vsel %vm94_vm0, %v92_v7, -inf  ;;  %v2276_v16 = vld [vmem:[#allocation5 + $0x18] sm:$0xff]  ;;  %v2299_v36 = vld [vmem:[%s2858_s2] sm:$0xff]  ;;  %v2306_v49 = vld [vmem:[%s2858_s2 + $0x8] sm:$0xff] }
  0x2b   :  { %96 = vmax.xlane.f32.xlu0 %v95_v11  ;;  %102 = vmax.xlane.f32.xlu1 %v101_v13  ;;  %v98_v14 = vsel %vm94_vm0, %v91_v8, -inf  ;;  %v2313_v50 = vld [vmem:[%s2859_s3] sm:$0xff]  ;;  %v2330_v53 = vld [vmem:[%s2859_s3 + $0x8] sm:$0xff]  ;;  %v2337_v54 = vld [vmem:[%s2859_s3 + $0x10] sm:$0xff] }
  0x2c   :  { %v104_v15 = vsel %vm94_vm0, %v93_v12, -inf  ;;  %1828 = vmatprep.subr.mxu0 %v2276_v16  ;;  %1850 = vmatprep.mubr.msk.f32.mxu1 %vm94_vm0, %v2299_v36  ;;  %v2348_v55 = vld [vmem:[%s2859_s3 + $0x18] sm:$0xff]  ;;  %s2209_s3 = smov [#allocation8]  }
  0x2d   :  { %1829 = vmatpush3.msra.mxu0 %v2276_v16  ;;  %s1712_s10 = sshll.u32 %s2209_s3, 4  ;;  %s1713_s10 = int_to_ptr.vmem [resolvable:$true] %s1712_s10 }
  0x2e   :  { %1830 = vmatprep.subr.mxu0 %v2278_v17  ;;  %s2156_s11 = scalar_lea.vmem %s1713_s10, 16  ;;  %s2160_s12 = scalar_lea.vmem %s1713_s10, 32 }
  0x2f   :  { %99 = vmax.xlane.f32.xlu0 %v98_v14  ;;  %105 = vmax.xlane.f32.xlu1 %v104_v15  ;;  %p2157_p1 = scmp.ne.s32.totalorder %s1713_s10, %s2156_s11  ;;  %p2161_p2 = scmp.lt.s32.totalorder %s1713_s10, %s1713_s10 }
  0x30   :  { %1831 = vmatpush3.msra.mxu0 %v2278_v17  ;;  %p2162_p3 = scmp.lt.s32.totalorder %s2160_s12, %s2156_s11 }
  0x31   :  { %1832 = vmatprep.subr.mxu0 %v2282_v18 }
  0x32   :  { %1833 = vmatpush3.msra.mxu0 %v2282_v18  ;;  %p2163_p4 = por %p2162_p3, %p2161_p2 }
  0x33   :  { %1834 = vmatprep.subr.mxu0 %v2288_v19 }
  0x34   :  { %1835 = vmatpush3.msra.mxu0 %v2288_v19  ;;  %p2164_p5 = pnand %p2163_p4, %p2157_p1 }
  0xb4   :  { %v97_v20 = vpop.xlane.xlu0 %96  ;;  %v103_v22 = vpop.xlane.xlu1 %102 }
  0xb5   :  { %v107_v21 = vsub.f32 %v90_v3, %v97_v20  ;;  %v109_v23 = vsub.f32 %v92_v7, %v103_v22 }
  0xb7   :  { %v111_v24 = vmul.f32 1.442695, %v107_v21  ;;  %v115_v25 = vmul.f32 1.442695, %v109_v23  ;;  %v2386_v21 = vld [vmem:[#allocation7 + $0x8] sm:$0xff] }
  0xb8   :  { %v100_v26 = vpop.xlane.xlu0 %99  ;;  %v106_v28 = vpop.xlane.xlu1 %105 }
  0xb9   :  { %1940 = vpow2.f32 %v111_v24  ;;  %v108_v27 = vsub.f32 %v91_v8, %v100_v26  ;;  %v110_v29 = vsub.f32 %v93_v12, %v106_v28 }
  0xba   :  { %1942 = vpow2.f32 %v115_v25 }
  0xbb   :  { %v113_v30 = vmul.f32 1.442695, %v108_v27  ;;  %v117_v31 = vmul.f32 1.442695, %v110_v29 }
  0xbd   :  { %1944 = vpow2.f32 %v113_v30 }
  0xbe   :  { %1946 = vpow2.f32 %v117_v31 }
  0xc6   :  { %v1941_v32 = vpop.eup %1940 }
  0xc7   :  { %1836 = vmatprep.mubr.msk.f32.mxu0 %vm94_vm0, %v1941_v32  ;;  %v1943_v33 = vpop.eup %1942 }
  0xca   :  { %v1945_v34 = vpop.eup %1944 }
  0xcb   :  { %1837 = vmatmul.mubr.msk.f32.vlgmr.msra.gmra.mxu0 %vm94_vm0, %v1945_v34  ;;  %v1947_v35 = vpop.eup %1946 }
  0xcc   :  { %1839 = vmatprep.mubr.msk.f32.mxu0 %vm94_vm0, %v1943_v33 }
  0xcf   :  { %1840 = vmatmul.mubr.msk.f32.gmra.mxu0 %vm94_vm0, %v1947_v35 }
  0xd0   :  { %1867 = vmatprep.mubr.msk.f32.mxu0 %vm378_vm1, %v2313_v50 }
 0x18b   :  { %v1838_v37 = vpop.f32.mrf.mxu0 }
 0x18d   :  { %v197_v38 = vpop.f32.mrf.mxu0 }
 0x18f   :  { %v1841_v39 = vpop.f32.mrf.mxu0 }
 0x190   :  { %1948 = vrcp.f32 %v1841_v39 }
 0x191   :  { %1950 = vrcp.f32 %v1838_v37  ;;  %v207_v40 = vpop.f32.mrf.mxu0 }
 0x192   :  { %1952 = vrcp.f32 %v207_v40 }
 0x193   :  { %1954 = vrcp.f32 %v197_v38  ;;  %v2428_v38 = vld [vmem:[#allocation7] sm:$0xff] }
 0x19d   :  { %v1949_v41 = vpop.eup %1948 }
 0x19e   :  { %v1951_v42 = vpop.eup %1950  ;;  %v223_v43 = vmul.f32 %v1949_v41, %v1947_v35 }
 0x19f   :  { %v1953_v44 = vpop.eup %1952  ;;  %v219_v47 = vmul.f32 %v1951_v42, %v1945_v34  ;;  %v2437_v42 = vld [vmem:[#allocation7 + $0x10] sm:$0xff] }
 0x1a0   :  { %1842 = vmatprep.subr.mxu1 %v223_v43  ;;  %v221_v45 = vmul.f32 %v1953_v44, %v1943_v33  ;;  %v1955_v46 = vpop.eup %1954 }
 0x1a1   :  { %1843 = vmatpush3.msra.mxu1 %v223_v43  ;;  %v217_v48 = vmul.f32 %v1955_v46, %v1941_v32 }
 0x1a2   :  { %1844 = vmatprep.subr.mxu1 %v221_v45 }
 0x1a3   :  { %1845 = vmatpush3.msra.mxu1 %v221_v45 }
 0x1a4   :  { %1846 = vmatprep.subr.mxu1 %v219_v47 }
 0x1a5   :  { %1847 = vmatpush3.msra.mxu1 %v219_v47 }
 0x1a6   :  { %1848 = vmatprep.subr.mxu1 %v217_v48 }
 0x1a7   :  { %1849 = vmatpush3.msra.mxu1 %v217_v48 }
 0x1a8   :  { %1851 = vmatmul.mubr.msk.f32.vlgmr.msra.gmra.mxu1 %vm94_vm0, %v2306_v49 }
 0x268   :  { %v2317_v51 = vpop.f32.mrf.mxu1 }
 0x269   :  { %1853 = vmatprep.subr.mxu1 %v2317_v51  ;;  %1863 = vmatprep.subr.mxu0 %v2317_v51  ;;  %v477_v6 = vmul.f32 %v2317_v51, %v2317_v51 }
 0x26a   :  { %v2321_v52 = vpop.f32.mrf.mxu1  ;;  %1854 = vmatpush3.msra.mxu1 %v2317_v51  ;;  %1864 = vmatpush3.msra.mxu0 %v2317_v51 }
 0x26b   :  { %346 = vxpose.xlu0.b32.start [1/2] (short) (narrow) %v2321_v52, 32  ;;  %1855 = vmatprep.subr.mxu1 %v2321_v52  ;;  %v305_v0 = vadd.f32 1e-10, %v2321_v52  ;;  %v476_v5 = vmul.f32 %v2321_v52, %v2321_v52  ;;  %v479_v8 = vsel %vm94_vm0, %v477_v6, 0.0 }
 0x26c   :  { %1865 = vmatprep.subr.mxu0 %v2321_v52  ;;  %1856 = vmatpush3.msra.mxu1 %v2321_v52 }
 0x26d   :  { %1866 = vmatpush3.msra.mxu0 %v2321_v52  ;;  %1956 = vlog2.f32 %v305_v0  ;;  %v478_v7 = vsel %vm94_vm0, %v476_v5, 0.0 }
 0x26e   :  { %1868 = vmatmul.mubr.msk.f32.vlgmr.msra.gmra.mxu0 %vm378_vm1, %v2330_v53  ;;  %v480_v9 = vadd.f32 %v479_v8, %v478_v7 }
 0x26f   :  { %347 = vxpose.xlu0.b32.end [2/2] (short) (narrow) %v2317_v51, 32  ;;  %1870 = vmatprep.mubr.msk.f32.mxu0 %vm378_vm1, %v2337_v54 }
 0x270   :  { %v481_v10 = vrot.slane %v480_v9, 4 }
 0x272   :  { %1871 = vmatmul.mubr.msk.f32.gmra.mxu0 %vm378_vm1, %v2348_v55  ;;  %v482_v11 = vadd.f32 %v481_v10, %v480_v9 }
 0x274   :  { %v483_v12 = vrot.slane %v482_v11, 2 }
 0x276   :  { %v484_v13 = vadd.f32 %v483_v12, %v482_v11 }
 0x278   :  { %v485_v14 = vrot.slane %v484_v13, 1 }
 0x27a   :  { %v1957_v1 = vpop.eup %1956  ;;  %v486_v15 = vadd.f32 %v485_v14, %v484_v13 }
 0x27b   :  { %v308_v2 = vmul.f32 0.6931472, %v1957_v1 }
 0x27c   :  { %v487_v20 = vmax.f32 %v486_v15, 1e-20 }
 0x27d   :  { %v311_v3 = vmul.f32 %v308_v2, %v2321_v52 }
 0x27e   :  { %1958 = vrsqrt.f32 %v487_v20 }
 0x27f   :  { %v313_v4 = vsel %vm94_vm0, %v311_v3, 0.0 }
 0x28b   :  { %v2388_v22 = vpop.eup %1958 }
 0x2e7   :  { %v362_v56 = vpop.trf.xlu0 }
 0x2e8   :  { %1857 = vmatprep.mubr.msk.f32.mxu1 %vm378_vm1, %v362_v56  ;;  %v2458_v56 = vld [vmem:[#allocation7 + $0x18] sm:$0xff] }
 0x2eb   :  { %v363_v57 = vpop.trf.xlu0 }
 0x2ec   :  { %1858 = vmatmul.mubr.msk.f32.vlgmr.msra.gmra.mxu1 %vm378_vm1, %v363_v57 }
 0x2ef   :  { %v364_v58 = vpop.trf.xlu0 }
 0x2f0   :  { %1860 = vmatprep.mubr.msk.f32.mxu1 %vm378_vm1, %v364_v58 }
 0x2f3   :  { %v365_v59 = vpop.trf.xlu0 }
 0x2f4   :  { %1861 = vmatmul.mubr.msk.f32.gmra.mxu1 %vm378_vm1, %v365_v59 }
 0x32e   :  { %v2356_v60 = vpop.f32.mrf.mxu0 }
 0x330   :  { %v2358_v61 = vpop.f32.mrf.mxu0 }
 0x331   :  { %736 = vxpose.xlu1.b32.start [1/4] (short) (narrow) %v2358_v61, 32 }
 0x332   :  { %v2361_v62 = vpop.f32.mrf.mxu0 }
 0x333   :  { %1873 = vmatprep.subr.mxu1 %v2361_v62 }
 0x334   :  { %v2364_v63 = vpop.f32.mrf.mxu0  ;;  %1874 = vmatpush3.msra.mxu1 %v2361_v62 }
 0x335   :  { %737 = vxpose.xlu1.b32.cont [2/4] (short) (narrow) %v2356_v60, 32  ;;  %1875 = vmatprep.subr.mxu1 %v2364_v63 }
 0x336   :  { %1876 = vmatpush3.msra.mxu1 %v2364_v63 }
 0x337   :  { %1877 = vmatprep.subr.mxu1 %v2356_v60 }
 0x338   :  { %1878 = vmatpush3.msra.mxu1 %v2356_v60 }
 0x339   :  { %738 = vxpose.xlu1.b32.cont [3/4] (short) (narrow) %v2364_v63, 32  ;;  %1879 = vmatprep.subr.mxu1 %v2358_v61 }
 0x33a   :  { %1880 = vmatpush3.msra.mxu1 %v2358_v61 }
 0x33b   :  { %1887 = vmatprep.subr.mxu1 %v2361_v62 }
 0x33d   :  { %739 = vxpose.xlu1.b32.end [4/4] (short) (narrow) %v2361_v62, 32 }
 0x364   :  { %314 = vadd.xlane.f32.xlu1 %v313_v4 }
 0x3ac   :  { %v1859_v23 = vpop.f32.mrf.mxu1 }
 0x3ad   :  { %v752_v24 = vpop.trf.xlu1  ;;  %v490_v25 = vmul.f32 %v1859_v23, %v2386_v21  ;;  %v2392_v26 = vmul.f32 %v2388_v22, %v1859_v23 }
 0x3ae   :  { %v2394_v27 = vpop.f32.mrf.mxu1  ;;  %1881 = vmatprep.mubr.msk.f32.mxu1 %vm94_vm0, %v752_v24 }
 0x3af   :  { %v2399_v28 = vmul.f32 %v2388_v22, %v2394_v27  ;;  %v496_v29 = vsel %vm94_vm0, %v490_v25, 0.0 }
 0x3b0   :  { %497 = vadd.xlane.f32.xlu1 %v496_v29 }
 0x3b1   :  { %v753_v30 = vpop.trf.xlu1 }
 0x3b2   :  { %1882 = vmatmul.mubr.msk.f32.vlgmr.msra.gmra.mxu1 %vm94_vm0, %v753_v30 }
 0x3b3   :  { %1888 = vmatpush3.msra.mxu1 %v2361_v62 }
 0x3b4   :  { %1889 = vmatprep.subr.mxu1 %v2364_v63  ;;  %v2405_v31 = vpop.f32.mrf.mxu1 }
 0x3b5   :  { %1890 = vmatpush3.msra.mxu1 %v2364_v63  ;;  %v754_v32 = vpop.trf.xlu1  ;;  %v2410_v33 = vmul.f32 %v2388_v22, %v2405_v31 }
 0x3b6   :  { %1891 = vmatprep.subr.mxu1 %v2356_v60  ;;  %1884 = vmatprep.mubr.msk.f32.mxu1 %vm94_vm0, %v754_v32  ;;  %v2424_v35 = vpop.f32.mrf.mxu1 }
 0x3b7   :  { %1892 = vmatpush3.msra.mxu1 %v2356_v60  ;;  %v491_v44 = vmul.f32 %v2424_v35, %v2437_v42 }
 0x3b8   :  { %1893 = vmatprep.subr.mxu1 %v2358_v61 }
 0x3b9   :  { %1894 = vmatpush3.msra.mxu1 %v2358_v61  ;;  %v755_v34 = vpop.trf.xlu1 }
 0x3ba   :  { %1885 = vmatmul.mubr.msk.f32.gmra.mxu1 %vm94_vm0, %v755_v34 }
 0x3bb   :  { %1895 = vmatprep.mubr.msk.f32.mxu1 %vm94_vm0, %v2299_v36 }
 0x3be   :  { %1896 = vmatmul.mubr.msk.f32.vlgmr.msra.gmra.mxu1 %vm94_vm0, %v2306_v49  ;;  %v499_v49 = vsel %vm94_vm0, %v491_v44, 0.0 }
 0x3bf   :  { %1912 = vmatprep.mubr.msk.f32.mxu1 %vm378_vm1, %v2313_v50 }
 0x3ed   :  { %v2475_v0 = vpop.xlane.xlu1 %314 }
 0x3ee   :  { %2867 = vst [vmem:[#allocation15_spill] sm:$0xff] %v2475_v0 }
 0x439   :  { %v2477_v1 = vpop.xlane.xlu1 %497 }
 0x43a   :  { %2868 = vst [vmem:[#allocation16_spill] sm:$0xff] %v2477_v1 }
 0x472   :  { %v2426_v37 = vpop.f32.mrf.mxu1 }
 0x473   :  { %v885_v36 = vmul.f32 %v2426_v37, %v2386_v21 }
 0x474   :  { %v2430_v39 = vpop.f32.mrf.mxu1 }
 0x475   :  { %v884_v40 = vmul.f32 %v2430_v39, %v2428_v38  ;;  %v891_v45 = vsel %vm94_vm0, %v885_v36, 0.0 }
 0x477   :  { %v888_v41 = vsel %vm94_vm0, %v884_v40, 0.0 }
 0x478   :  { %889 = vadd.xlane.f32.xlu1 %v888_v41 }
 0x47a   :  { %v2439_v43 = vpop.f32.mrf.mxu1 }
 0x47b   :  { %v887_v57 = vmul.f32 %v2439_v43, %v2458_v56 }
 0x47c   :  { %v2444_v46 = vpop.f32.mrf.mxu1  ;;  %892 = vadd.xlane.f32.xlu1 %v891_v45 }
 0x47d   :  { %v886_v48 = vmul.f32 %v2444_v46, %v2437_v42  ;;  %v897_v59 = vsel %vm94_vm0, %v887_v57, 0.0 }
 0x47e   :  { %v2446_v47 = vpop.f32.mrf.mxu1 }
 0x47f   :  { %1908 = vmatprep.subr.mxu1 %v2446_v47  ;;  %1898 = vmatprep.subr.mxu0 %v2446_v47  ;;  %v894_v58 = vsel %vm94_vm0, %v886_v48, 0.0 }
 0x480   :  { %v2453_v50 = vpop.f32.mrf.mxu1  ;;  %1909 = vmatpush3.msra.mxu1 %v2446_v47  ;;  %500 = vadd.xlane.f32.xlu1 %v499_v49 }
 0x481   :  { %1899 = vmatpush3.msra.mxu0 %v2446_v47  ;;  %1089 = vxpose.xlu0.b32.start [1/2] (short) (narrow) %v2453_v50, 32 }
 0x482   :  { %1910 = vmatprep.subr.mxu1 %v2453_v50  ;;  %1900 = vmatprep.subr.mxu0 %v2453_v50 }
 0x483   :  { %1911 = vmatpush3.msra.mxu1 %v2453_v50  ;;  %1901 = vmatpush3.msra.mxu0 %v2453_v50 }
 0x484   :  { %1913 = vmatmul.mubr.msk.f32.vlgmr.msra.gmra.mxu1 %vm378_vm1, %v2330_v53  ;;  %895 = vadd.xlane.f32.xlu1 %v894_v58 }
 0x485   :  { %1090 = vxpose.xlu0.b32.end [2/2] (short) (narrow) %v2446_v47, 32  ;;  %1915 = vmatprep.mubr.msk.f32.mxu1 %vm378_vm1, %v2337_v54 }
 0x488   :  { %1916 = vmatmul.mubr.msk.f32.gmra.mxu1 %vm378_vm1, %v2348_v55  ;;  %898 = vadd.xlane.f32.xlu1 %v897_v59 }
 0x4fd   :  { %v1105_v2 = vpop.trf.xlu0 }
 0x4fe   :  { %1902 = vmatprep.mubr.msk.f32.mxu0 %vm378_vm1, %v1105_v2 }
 0x501   :  { %v1106_v53 = vpop.trf.xlu0  ;;  %v890_v3 = vpop.xlane.xlu1 %889 }
 0x502   :  { %v900_v4 = vmax.f32 %v890_v3, 1e-20  ;;  %1903 = vmatmul.mubr.msk.f32.vlgmr.msra.gmra.mxu0 %vm378_vm1, %v1106_v53 }
 0x504   :  { %1960 = vrsqrt.f32 %v900_v4 }
 0x505   :  { %v1107_v54 = vpop.trf.xlu0  ;;  %v893_v5 = vpop.xlane.xlu1 %892 }
 0x506   :  { %v901_v6 = vmax.f32 %v893_v5, 1e-20  ;;  %1905 = vmatprep.mubr.msk.f32.mxu0 %vm378_vm1, %v1107_v54 }
 0x508   :  { %1962 = vrsqrt.f32 %v901_v6 }
 0x509   :  { %v1108_v55 = vpop.trf.xlu0  ;;  %v501_v7 = vpop.xlane.xlu1 %500 }
 0x50a   :  { %v507_v8 = vmax.f32 %v501_v7, 1e-20  ;;  %1906 = vmatmul.mubr.msk.f32.gmra.mxu0 %vm378_vm1, %v1108_v55 }
 0x50c   :  { %1964 = vrsqrt.f32 %v507_v8 }
 0x50d   :  { %v896_v9 = vpop.xlane.xlu1 %895 }
 0x50e   :  { %v902_v10 = vmax.f32 %v896_v9, 1e-20 }
 0x510   :  { %1966 = vrsqrt.f32 %v902_v10  ;;  %v489_v10 = vmul.f32 %v2394_v27, %v2428_v38 }
 0x511   :  { %v2483_v11 = vpop.eup %1960 }
 0x512   :  { %v940_v12 = vmul.f32 %v2483_v11, %v890_v3 }
 0x514   :  { %v2487_v13 = vmul.f32 %v2483_v11, %v940_v12  ;;  %v492_v12 = vmul.f32 %v2405_v31, %v2458_v56 }
 0x515   :  { %v2489_v14 = vpop.eup %1962 }
 0x516   :  { %2869 = vst [vmem:[#allocation17_spill] sm:$0xff] %v2487_v13  ;;  %v941_v15 = vmul.f32 %v2489_v14, %v893_v5 }
 0x518   :  { %v2493_v20 = vmul.f32 %v2489_v14, %v941_v15  ;;  %v493_v15 = vsel %vm94_vm0, %v489_v10, 0.0 }
 0x519   :  { %v2495_v23 = vpop.eup %1964 }
 0x51a   :  { %2870 = vst [vmem:[#allocation18_spill] sm:$0xff] %v2493_v20  ;;  %v547_v24 = vmul.f32 %v2495_v23, %v501_v7 }
 0x51c   :  { %v2499_v25 = vmul.f32 %v2495_v23, %v547_v24  ;;  %v502_v24 = vsel %vm94_vm0, %v492_v12, 0.0 }
 0x51d   :  { %v2501_v29 = vpop.eup %1966 }
 0x51e   :  { %2871 = vst [vmem:[#allocation19_spill] sm:$0xff] %v2499_v25  ;;  %v942_v30 = vmul.f32 %v2501_v29, %v896_v9 }
 0x520   :  { %v2505_v32 = vmul.f32 %v2501_v29, %v942_v30  ;;  %v1218_v30 = vmul.f32 %v2453_v50, %v2453_v50 }
 0x522   :  { %2872 = vst [vmem:[#allocation20_spill] sm:$0xff] %v2505_v32 }
 0x544   :  { %v2507_v34 = vpop.f32.mrf.mxu1 }
 0x545   :  { %v1596_v40 = vmul.f32 %v2507_v34, %v2507_v34  ;;  %v1445_v41 = vsel %vm94_vm0, %v2507_v34, 0.0 }
 0x546   :  { %v2511_v36 = vpop.f32.mrf.mxu1 }
 0x547   :  { %v1444_v44 = vsel %vm94_vm0, %v2511_v36, 0.0  ;;  %v1595_v45 = vmul.f32 %v2511_v36, %v2511_v36  ;;  %1466 = vxpose.xlu0.b32.start [1/4] (short) (narrow) %v2511_v36, 32  ;;  %v1600_v57 = vsel %vm94_vm0, %v1596_v40, 0.0  ;;  %v1219_v40 = vmul.f32 %v2446_v47, %v2446_v47 }
 0x548   :  { %v2520_v48 = vpop.f32.mrf.mxu1  ;;  %v1446_v49 = vadd.f32 %v1445_v41, %v1444_v44  ;;  %v1220_v41 = vsel %vm94_vm0, %v1218_v30, 0.0 }
 0x549   :  { %v1599_v58 = vsel %vm94_vm0, %v1595_v45, 0.0  ;;  %v1598_v59 = vmul.f32 %v2520_v48, %v2520_v48  ;;  %1918 = vmatprep.subr.mxu0 %v2520_v48  ;;  %v1449_v54 = vsel %vm94_vm0, %v2520_v48, 0.0  ;;  %v1221_v44 = vsel %vm94_vm0, %v1219_v40, 0.0 }
 0x54a   :  { %v2527_v2 = vpop.f32.mrf.mxu1  ;;  %v1601_v53 = vadd.f32 %v1600_v57, %v1599_v58  ;;  %1919 = vmatpush3.msra.mxu0 %v2520_v48  ;;  %v1222_v27 = vadd.f32 %v1221_v44, %v1220_v41 }
 0x54b   :  { %2873 = vst [vmem:[#allocation21_spill] sm:$0xff] %v2527_v2  ;;  %v1447_v3 = vsel %vm94_vm0, %v2527_v2, 0.0  ;;  %v1597_v4 = vmul.f32 %v2527_v2, %v2527_v2  ;;  %1467 = vxpose.xlu0.b32.cont [2/4] (short) (narrow) %v2507_v34, 32  ;;  %1920 = vmatprep.subr.mxu0 %v2527_v2  ;;  %v1604_v6 = vsel %vm94_vm0, %v1598_v59, 0.0 }
 0x54c   :  { %v1448_v5 = vadd.f32 %v1447_v3, %v1446_v49  ;;  %1921 = vmatpush3.msra.mxu0 %v2527_v2  ;;  %v1223_v45 = vrot.slane %v1222_v27, 4 }
 0x54d   :  { %v1602_v55 = vsel %vm94_vm0, %v1597_v4, 0.0  ;;  %1922 = vmatprep.subr.mxu0 %v2507_v34 }
 0x54e   :  { %v1603_v7 = vadd.f32 %v1602_v55, %v1601_v53  ;;  %1923 = vmatpush3.msra.mxu0 %v2507_v34  ;;  %v2543_v8 = vadd.f32 %v1449_v54, %v1448_v5  ;;  %v1224_v49 = vadd.f32 %v1223_v45, %v1222_v27 }
 0x54f   :  { %1468 = vxpose.xlu0.b32.cont [3/4] (short) (narrow) %v2527_v2, 32  ;;  %1924 = vmatprep.subr.mxu0 %v2511_v36 }
 0x550   :  { %v2547_v9 = vadd.f32 %v1604_v6, %v1603_v7  ;;  %1925 = vmatpush3.msra.mxu0 %v2511_v36  ;;  %v1225_v31 = vrot.slane %v1224_v49, 2 }
 0x552   :  { %v1226_v57 = vadd.f32 %v1225_v31, %v1224_v49 }
 0x553   :  { %1469 = vxpose.xlu0.b32.end [4/4] (short) (narrow) %v2520_v48, 32 }
 0x554   :  { %v1227_v58 = vrot.slane %v1226_v57, 1 }
 0x556   :  { %v1228_v59 = vadd.f32 %v1227_v58, %v1226_v57 }
 0x558   :  { %v1229_v53 = vmax.f32 %v1228_v59, 1e-20 }
 0x55a   :  { %1968 = vrsqrt.f32 %v1229_v53 }
 0x567   :  { %v2563_v3 = vpop.eup %1968 }
 0x580   :  { %494 = vadd.xlane.f32.xlu0 %v493_v15 }
 0x584   :  { %503 = vadd.xlane.f32.xlu0 %v502_v24 }
 0x5c2   :  { %v1904_v4 = vpop.f32.mrf.mxu0 }
 0x5c3   :  { %v1482_v54 = vpop.trf.xlu0  ;;  %v1232_v5 = vmul.f32 %v1904_v4, %v2386_v21  ;;  %v2567_v6 = vmul.f32 %v2563_v3, %v1904_v4 }
 0x5c4   :  { %v1199_v55 = vpop.f32.mrf.mxu0  ;;  %1926 = vmatprep.mubr.msk.f32.mxu0 %vm94_vm0, %v1482_v54 }
 0x5c5   :  { %v1231_v7 = vmul.f32 %v1199_v55, %v2428_v38  ;;  %v2572_v10 = vmul.f32 %v2563_v3, %v1199_v55  ;;  %v1238_v12 = vsel %vm94_vm0, %v1232_v5, 0.0  ;;  %v2595_v5 = vpop.xlane.xlu1 %898 }
 0x5c6   :  { %1239 = vadd.xlane.f32.xlu1 %v1238_v12  ;;  %v865_v12 = vmul.f32 %v2358_v61, %v2358_v61 }
 0x5c7   :  { %v1483_v15 = vpop.trf.xlu0  ;;  %v1235_v24 = vsel %vm94_vm0, %v1231_v7, 0.0 }
 0x5c8   :  { %1927 = vmatmul.mubr.msk.f32.vlgmr.msra.gmra.mxu0 %vm94_vm0, %v1483_v15  ;;  %v866_v15 = vmul.f32 %v2356_v60, %v2356_v60 }
 0x5ca   :  { %v1907_v30 = vpop.f32.mrf.mxu0  ;;  %1236 = vadd.xlane.f32.xlu1 %v1235_v24  ;;  %v867_v24 = vmul.f32 %v2364_v63, %v2364_v63 }
 0x5cb   :  { %v1484_v40 = vpop.trf.xlu0  ;;  %v1234_v41 = vmul.f32 %v1907_v30, %v2458_v56  ;;  %v2579_v44 = vmul.f32 %v2563_v3, %v1907_v30 }
 0x5cc   :  { %v2581_v27 = vpop.f32.mrf.mxu0  ;;  %1929 = vmatprep.mubr.msk.f32.mxu0 %vm94_vm0, %v1484_v40 }
 0x5cd   :  { %v1233_v45 = vmul.f32 %v2581_v27, %v2437_v42  ;;  %v1244_v49 = vsel %vm94_vm0, %v1234_v41, 0.0  ;;  %v869_v41 = vsel %vm94_vm0, %v865_v12, 0.0 }
 0x5ce   :  { %1245 = vadd.xlane.f32.xlu1 %v1244_v49  ;;  %v870_v49 = vsel %vm94_vm0, %v866_v15, 0.0 }
 0x5cf   :  { %v1485_v31 = vpop.trf.xlu0  ;;  %v1241_v57 = vsel %vm94_vm0, %v1233_v45, 0.0  ;;  %v328_v45 = vsel %vm94_vm0, %v2321_v52, 0.0  ;;  %v1606_v52 = vrot.slane %v2547_v9, 4 }
 0x5d0   :  { %1930 = vmatmul.mubr.msk.f32.gmra.mxu0 %vm94_vm0, %v1485_v31  ;;  %1242 = vadd.xlane.f32.xlu0 %v1241_v57  ;;  %v868_v31 = vmul.f32 %v2361_v62, %v2361_v62  ;;  %v872_v57 = vsel %vm94_vm0, %v867_v24, 0.0 }
 0x5d2   :  { %v874_v20 = vsel %vm94_vm0, %v868_v31, 0.0 }
 0x609   :  { %v495_v58 = vpop.xlane.xlu0 %494 }
 0x60a   :  { %v505_v59 = vmax.f32 %v495_v58, 1e-20 }
 0x60c   :  { %1970 = vrsqrt.f32 %v505_v59  ;;  %v329_v59 = vsel %vm94_vm0, %v2317_v51, 0.0 }
 0x619   :  { %v2589_v53 = vpop.eup %1970 }
 0x61a   :  { %v545_v4 = vmul.f32 %v2589_v53, %v495_v58  ;;  %v871_v58 = vadd.f32 %v870_v49, %v869_v41 }
 0x61c   :  { %v2593_v54 = vmul.f32 %v2589_v53, %v545_v4  ;;  %v330_v4 = vadd.f32 %v329_v59, %v328_v45  ;;  %v1607_v45 = vadd.f32 %v1606_v52, %v2547_v9  ;;  %v506_v9 = vmax.f32 %v2477_v1, 1e-20 }
 0x61e   :  { %2874 = vst [vmem:[#allocation22_spill] sm:$0xff] %v2593_v54  ;;  %v331_v12 = vrot.slane %v330_v4, 4 }
 0x620   :  { %v332_v13 = vadd.f32 %v331_v12, %v330_v4  ;;  %v715_v4 = vsel %vm94_vm0, %v2356_v60, 0.0 }
 0x622   :  { %v333_v31 = vrot.slane %v332_v13, 2 }
 0x624   :  { %v334_v59 = vadd.f32 %v333_v31, %v332_v13 }
 0x64f   :  { %v1240_v55 = vpop.xlane.xlu1 %1239 }
 0x650   :  { %v1248_v7 = vmax.f32 %v1240_v55, 1e-20 }
 0x652   :  { %1972 = vrsqrt.f32 %v1248_v7  ;;  %v873_v7 = vadd.f32 %v872_v57, %v871_v58  ;;  %v1608_v58 = vrot.slane %v1607_v45, 2 }
 0x653   :  { %v1237_v30 = vpop.xlane.xlu1 %1236 }
 0x654   :  { %v1247_v40 = vmax.f32 %v1237_v30, 1e-20  ;;  %v1609_v52 = vadd.f32 %v1608_v58, %v1607_v45 }
 0x656   :  { %1974 = vrsqrt.f32 %v1247_v40  ;;  %v875_v40 = vadd.f32 %v874_v20, %v873_v7  ;;  %v717_v7 = vsel %vm94_vm0, %v2364_v63, 0.0  ;;  %v1610_v13 = vrot.slane %v1609_v52, 1 }
 0x657   :  { %1976 = vrsqrt.f32 %v506_v9 }
 0x658   :  { %v876_v0 = vrot.slane %v875_v40, 4  ;;  %v1611_v2 = vadd.f32 %v1610_v13, %v1609_v52  ;;  %v306_v52 = vadd.f32 1e-10, %v2317_v51 }
 0x65a   :  { %v877_v57 = vadd.f32 %v876_v0, %v875_v40  ;;  %v2634_v0 = vpop.xlane.xlu0 %503  ;;  %v1612_v58 = vmax.f32 %v1611_v2, 1e-20 }
 0x65b   :  { %v508_v31 = vmax.f32 %v2634_v0, 1e-20 }
 0x65c   :  { %v878_v12 = vrot.slane %v877_v57, 2 }
 0x65d   :  { %1978 = vrsqrt.f32 %v508_v31  ;;  %v903_v31 = vmax.f32 %v2595_v5, 1e-20 }
 0x65e   :  { %1980 = vrsqrt.f32 %v1612_v58 }
 0x65f   :  { %v2613_v32 = vpop.eup %1972 }
 0x660   :  { %v1288_v15 = vmul.f32 %v2613_v32, %v1240_v55  ;;  %v714_v55 = vsel %vm94_vm0, %v2358_v61, 0.0 }
 0x662   :  { %v2618_v24 = vmul.f32 %v2613_v32, %v1288_v15  ;;  %v335_v15 = vrot.slane %v334_v59, 1 }
 0x663   :  { %v2620_v41 = vpop.eup %1974 }
 0x664   :  { %2875 = vst [vmem:[#allocation23_spill] sm:$0xff] %v2618_v24  ;;  %v1287_v49 = vmul.f32 %v2620_v41, %v1237_v30  ;;  %v716_v30 = vadd.f32 %v715_v4, %v714_v55  ;;  %v336_v25 = vadd.f32 %v335_v15, %v334_v59  ;;  %v1071_v4 = vsel %vm94_vm0, %v2453_v50, 0.0  ;;  %v2646_v59 = vpop.eup %1976 }
 0x665   :  { %v518_v2 = vmul.f32 %v2646_v59, %v2392_v26 }
 0x666   :  { %v2625_v20 = vmul.f32 %v2620_v41, %v1287_v49  ;;  %v718_v40 = vadd.f32 %v717_v7, %v716_v30  ;;  %v719_v49 = vsel %vm94_vm0, %v2361_v62, 0.0  ;;  %v2639_v55 = vmul.f32 0.0625, %v336_v25 }
 0x668   :  { %2876 = vst [vmem:[#allocation24_spill] sm:$0xff] %v2625_v20  ;;  %v879_v20 = vadd.f32 %v878_v12, %v877_v57  ;;  %v720_v24 = vadd.f32 %v719_v49, %v718_v40  ;;  %v338_v57 = vadd.f32 1e-10, %v2639_v55  ;;  %v1072_v12 = vsel %vm94_vm0, %v2446_v47, 0.0 }
 0x669   :  { %v1073_v30 = vadd.f32 %v1072_v12, %v1071_v4  ;;  %v523_v40 = vmul.f32 1.442695, %v518_v2  ;;  %v515_v49 = vmul.f32 %v2388_v22, %v2424_v35  ;;  %v676_v4 = vadd.f32 1e-10, %v2356_v60 }
 0x66a   :  { %v880_v54 = vrot.slane %v879_v20, 1  ;;  %v721_v1 = vrot.slane %v720_v24, 4  ;;  %1982 = vlog2.f32 %v338_v57  ;;  %v675_v12 = vadd.f32 1e-10, %v2358_v61 }
 0x66b   :  { %v519_v58 = vmul.f32 %v2495_v23, %v515_v49  ;;  %v678_v23 = vadd.f32 1e-10, %v2361_v62  ;;  %v677_v49 = vadd.f32 1e-10, %v2364_v63 }
 0x66c   :  { %v881_v45 = vadd.f32 %v880_v54, %v879_v20  ;;  %v722_v7 = vadd.f32 %v721_v1, %v720_v24  ;;  %v1074_v54 = vrot.slane %v1073_v30, 4  ;;  %v2651_v1 = vpop.eup %1978  ;;  %v517_v20 = vmul.f32 %v2589_v53, %v2399_v28 }
 0x66d   :  { %v520_v13 = vmul.f32 %v2651_v1, %v2410_v33  ;;  %v1981_v28 = vpop.eup %1980 }
 0x66e   :  { %v882_v9 = vmax.f32 %v881_v45, 1e-20  ;;  %v723_v25 = vrot.slane %v722_v7, 2  ;;  %v1075_v15 = vadd.f32 %v1074_v54, %v1073_v30  ;;  %v521_v26 = vmul.f32 1.442695, %v517_v20 }
 0x66f   :  { %v527_v57 = vmul.f32 1.442695, %v520_v13 }
 0x670   :  { %1984 = vrsqrt.f32 %v882_v9  ;;  %v724_v24 = vadd.f32 %v723_v25, %v722_v7  ;;  %v1076_v7 = vrot.slane %v1075_v15, 2  ;;  %v525_v9 = vmul.f32 1.442695, %v519_v58 }
 0x671   :  { %1986 = vlog2.f32 %v306_v52 }
 0x672   :  { %v725_v45 = vrot.slane %v724_v24, 1  ;;  %1988 = vpow2.f32 %v523_v40  ;;  %v1077_v25 = vadd.f32 %v1076_v7, %v1075_v15 }
 0x673   :  { %1990 = vrsqrt.f32 %v903_v31 }
 0x674   :  { %v726_v22 = vadd.f32 %v725_v45, %v724_v24  ;;  %1992 = vpow2.f32 %v521_v26  ;;  %v2672_v24 = vpop.xlane.xlu1 %1245  ;;  %v1078_v58 = vrot.slane %v1077_v25, 1 }
 0x675   :  { %1994 = vlog2.f32 %v676_v4 }
 0x676   :  { %1996 = vpow2.f32 %v527_v57  ;;  %v2675_v13 = vmul.f32 0.03125, %v726_v22 }
 0x677   :  { %v1983_v30 = vpop.eup %1982  ;;  %1998 = vlog2.f32 %v675_v12 }
 0x678   :  { %v340_v45 = vmul.f32 0.6931472, %v1983_v30  ;;  %2000 = vpow2.f32 %v525_v9 }
 0x679   :  { %2002 = vlog2.f32 %v678_v23 }
 0x67a   :  { %2004 = vlog2.f32 %v677_v49  ;;  %v341_v9 = vmul.f32 %v340_v45, %v2639_v55 }
 0x67d   :  { %v1985_v2 = vpop.eup %1984 }
 0x67e   :  { %v1987_v31 = vpop.eup %1986  ;;  %v910_v4 = vmul.f32 %v1985_v2, %v2444_v46  ;;  %v1079_v46 = vadd.f32 %v1078_v58, %v1077_v25  ;;  %v1451_v25 = vrot.slane %v2543_v8, 4 }
 0x67f   :  { %v310_v57 = vmul.f32 0.6931472, %v1987_v31 }
 0x680   :  { %v914_v23 = vmul.f32 %v2501_v29, %v910_v4  ;;  %v2705_v58 = vmul.f32 0.0625, %v1079_v46 }
 0x681   :  { %v312_v29 = vmul.f32 %v2317_v51, %v310_v57 }
 0x688   :  { %v1928_v53 = vpop.f32.mrf.mxu0 }
 0x689   :  { %v1615_v35 = vmul.f32 %v1928_v53, %v2386_v21  ;;  %v2664_v33 = vmul.f32 %v1981_v28, %v1928_v53  ;;  %v908_v21 = vmul.f32 %v1985_v2, %v2430_v39  ;;  %v1250_v39 = vmax.f32 %v2672_v24, 1e-20 }
 0x68a   :  { %v1576_v52 = vpop.f32.mrf.mxu0  ;;  %v728_v53 = vadd.f32 1e-10, %v2675_v13 }
 0x68b   :  { %v1614_v54 = vmul.f32 %v1576_v52, %v2428_v38  ;;  %v2668_v20 = vmul.f32 %v1981_v28, %v1576_v52  ;;  %v1621_v40 = vsel %vm94_vm0, %v1615_v35, 0.0  ;;  %v2678_v38 = vpop.xlane.xlu0 %1242  ;;  %v912_v26 = vmul.f32 %v2483_v11, %v908_v21 }
 0x68c   :  { %1622 = vadd.xlane.f32.xlu0 %v1621_v40  ;;  %v1249_v12 = vmax.f32 %v2678_v38, 1e-20  ;;  %v909_v11 = vmul.f32 %v1985_v2, %v2426_v37  ;;  %2006 = vrsqrt.f32 %v1250_v39 }
 0x68d   :  { %v1618_v15 = vsel %vm94_vm0, %v1614_v54, 0.0  ;;  %v916_v52 = vmul.f32 1.442695, %v912_v26  ;;  %v1989_v54 = vpop.eup %1988  ;;  %2008 = vlog2.f32 %v728_v53  ;;  %v920_v26 = vmul.f32 1.442695, %v914_v23 }
 0x68e   :  { %1619 = vadd.xlane.f32.xlu1 %v1618_v15  ;;  %v2696_v55 = vpop.eup %1990  ;;  %2010 = vrsqrt.f32 %v1249_v12  ;;  %v1048_v15 = vadd.f32 1e-10, %v2453_v50 }
 0x68f   :  { %v1993_v31 = vpop.eup %1992  ;;  %2012 = vpow2.f32 %v916_v52 }
 0x690   :  { %v1931_v7 = vpop.f32.mrf.mxu0  ;;  %v1995_v45 = vpop.eup %1994  ;;  %v529_v57 = vmul.f32 %v1993_v31, %v2288_v19  ;;  %2014 = vlog2.f32 %v1048_v15  ;;  %v1049_v19 = vadd.f32 1e-10, %v2446_v47 }
 0x691   :  { %v1617_v22 = vmul.f32 %v1931_v7, %v2458_v56  ;;  %v2686_v35 = vmul.f32 %v1981_v28, %v1931_v7  ;;  %v913_v56 = vmul.f32 %v2489_v14, %v909_v11  ;;  %v911_v14 = vmul.f32 %v1985_v2, %v2439_v43  ;;  %v1997_v39 = vpop.eup %1996 }
 0x692   :  { %v1586_v30 = vpop.f32.mrf.mxu0  ;;  %v1999_v4 = vpop.eup %1998  ;;  %v316_v7 = vsel %vm94_vm0, %v312_v29, 0.0  ;;  %v532_v2 = vmul.f32 %v1997_v39, %v2276_v16  ;;  %2016 = vpow2.f32 %v920_v26 }
 0x693   :  { %v1616_v40 = vmul.f32 %v1586_v30, %v2437_v42  ;;  %v2692_v21 = vmul.f32 %v1981_v28, %v1586_v30  ;;  %v1627_v49 = vsel %vm94_vm0, %v1617_v22, 0.0  ;;  %v342_v42 = vsel %vm94_vm0, %v341_v9, 0.0  ;;  %v2001_v12 = vpop.eup %2000 }
 0x694   :  { %1628 = vadd.xlane.f32.xlu1 %v1627_v49  ;;  %v530_v28 = vmul.f32 %v1989_v54, %v2282_v18  ;;  %v918_v51 = vmul.f32 1.442695, %v913_v56  ;;  %v915_v53 = vmul.f32 %v2696_v55, %v911_v14  ;;  %v1452_v18 = vadd.f32 %v1451_v25, %v2543_v8  ;;  %v2003_v11 = vpop.eup %2002 }
 0x695   :  { %v1624_v37 = vsel %vm94_vm0, %v1616_v40, 0.0  ;;  %v682_v22 = vmul.f32 0.6931472, %v1995_v45  ;;  %v1081_v9 = vadd.f32 1e-10, %v2705_v58  ;;  %v2005_v52 = vpop.eup %2004  ;;  %v533_v8 = vsel %vm94_vm0, %v529_v57, 0.0 }
 0x696   :  { %1625 = vadd.xlane.f32.xlu0 %v1624_v37  ;;  %v536_v43 = vsel %vm94_vm0, %v530_v28, 0.0  ;;  %v680_v30 = vmul.f32 0.6931472, %v1999_v4  ;;  %2018 = vpow2.f32 %v918_v51  ;;  %v531_v23 = vmul.f32 %v2001_v12, %v2278_v17 }
 0x697   :  { %v922_v46 = vmul.f32 1.442695, %v915_v53  ;;  %v1453_v54 = vrot.slane %v1452_v18, 2  ;;  %v688_v40 = vmul.f32 %v2356_v60, %v682_v22  ;;  %v542_v16 = vsel %vm94_vm0, %v532_v2, 0.0 }
 0x698   :  { %343 = vadd.xlane.f32.xlu1 %v342_v42  ;;  %v686_v49 = vmul.f32 0.6931472, %v2003_v11  ;;  %2020 = vlog2.f32 %v1081_v9  ;;  %v1260_v56 = vmul.f32 %v2613_v32, %v2567_v6  ;;  %v687_v29 = vmul.f32 %v680_v30, %v2358_v61  ;;  %v2747_v30 = vld [vmem:[#allocation5 + $0x10] sm:$0xff] }
 0x699   :  { %v2721_v37 = vpop.eup %2006  ;;  %v684_v25 = vmul.f32 0.6931472, %v2005_v52  ;;  %2022 = vlog2.f32 %v1049_v19  ;;  %v539_v31 = vsel %vm94_vm0, %v531_v23, 0.0  ;;  %v1259_v60 = vmul.f32 %v2620_v41, %v2572_v10 }
 0x69a   :  { %317 = vadd.xlane.f32.xlu0 %v316_v7  ;;  %v2009_v17 = vpop.eup %2008  ;;  %2024 = vpow2.f32 %v922_v46  ;;  %v1454_v42 = vadd.f32 %v1453_v54, %v1452_v18  ;;  %v694_v32 = vsel %vm94_vm0, %v688_v40, 0.0  ;;  %v1257_v6 = vmul.f32 %v2563_v3, %v2581_v27  ;;  %v2740_v7 = vld [vmem:[#allocation5] sm:$0xff]  ;;  %v2752_v46 = vld [vmem:[#allocation5 + $0x8] sm:$0xff]  ;;  %v2877_v40 = vld [vmem:[#allocation21_spill] sm:$0xff] }
 0x69b   :  { %v2727_v28 = vpop.eup %2010  ;;  %v690_v61 = vmul.f32 %v2361_v62, %v686_v49  ;;  %v1265_v15 = vmul.f32 1.442695, %v1260_v56  ;;  %v1262_v45 = vmul.f32 %v2721_v37, %v2579_v44  ;;  %v691_v26 = vsel %vm94_vm0, %v687_v29, 0.0 }
 0x69c   :  { %537 = vadd.xlane.f32.xlu1 %v536_v43  ;;  %v2013_v14 = vpop.eup %2012  ;;  %v730_v10 = vmul.f32 0.6931472, %v2009_v17  ;;  %v689_v41 = vmul.f32 %v684_v25, %v2364_v63  ;;  %v1263_v39 = vmul.f32 1.442695, %v1259_v60  ;;  %v1261_v51 = vmul.f32 %v2727_v28, %v1257_v6 }
 0x69d   :  { %v1455_v4 = vrot.slane %v1454_v42, 1  ;;  %v1406_v3 = vadd.f32 1e-10, %v2507_v34  ;;  %v2015_v27 = vpop.eup %2014  ;;  %v700_v62 = vsel %vm94_vm0, %v690_v61, 0.0  ;;  %v924_v44 = vmul.f32 %v2740_v7, %v2013_v14 }
 0x69e   :  { %534 = vadd.xlane.f32.xlu0 %v533_v8  ;;  %2026 = vpow2.f32 %v1265_v15  ;;  %v1269_v57 = vmul.f32 1.442695, %v1262_v45  ;;  %v731_v63 = vmul.f32 %v730_v10, %v2675_v13  ;;  %v1405_v18 = vadd.f32 1e-10, %v2511_v36 }
 0x69f   :  { %v2017_v53 = vpop.eup %2016  ;;  %v697_v22 = vsel %vm94_vm0, %v689_v41, 0.0  ;;  %2028 = vpow2.f32 %v1263_v39  ;;  %v1267_v43 = vmul.f32 1.442695, %v1261_v51  ;;  %v1456_v2 = vadd.f32 %v1455_v4, %v1454_v42  ;;  %v2761_v42 = vld [vmem:[#allocation5 + $0x18] sm:$0xff] }
 0x6a0   :  { %543 = vadd.xlane.f32.xlu1 %v542_v16  ;;  %v1051_v9 = vmul.f32 0.6931472, %v2015_v27  ;;  %2030 = vlog2.f32 %v1406_v3  ;;  %v928_v11 = vsel %vm94_vm0, %v924_v44, 0.0  ;;  %v926_v19 = vmul.f32 %v2747_v30, %v2017_v53 }
 0x6a1   :  { %2032 = vpow2.f32 %v1269_v57  ;;  %v1408_v13 = vadd.f32 1e-10, %v2520_v48  ;;  %v732_v8 = vsel %vm94_vm0, %v731_v63, 0.0  ;;  %v1407_v16 = vadd.f32 1e-10, %v2877_v40 }
 0x6a2   :  { %540 = vadd.xlane.f32.xlu0 %v539_v31  ;;  %2034 = vlog2.f32 %v1405_v18  ;;  %v2756_v49 = vmul.f32 0.03125, %v1456_v2  ;;  %v934_v29 = vsel %vm94_vm0, %v926_v19, 0.0  ;;  %v1054_v25 = vmul.f32 %v1051_v9, %v2453_v50 }
 0x6a3   :  { %v2019_v12 = vpop.eup %2018  ;;  %2036 = vpow2.f32 %v1267_v43 }
 0x6a4   :  { %695 = vadd.xlane.f32.xlu1 %v694_v32  ;;  %v925_v54 = vmul.f32 %v2752_v46, %v2019_v12  ;;  %2038 = vlog2.f32 %v1408_v13  ;;  %v1458_v6 = vadd.f32 1e-10, %v2756_v49  ;;  %v1056_v61 = vsel %vm94_vm0, %v1054_v25, 0.0 }
 0x6a5   :  { %v2021_v52 = vpop.eup %2020  ;;  %2040 = vlog2.f32 %v1407_v16 }
 0x6a6   :  { %692 = vadd.xlane.f32.xlu0 %v691_v26  ;;  %v2023_v23 = vpop.eup %2022  ;;  %v1083_v17 = vmul.f32 0.6931472, %v2021_v52  ;;  %v931_v60 = vsel %vm94_vm0, %v925_v54, 0.0  ;;  %2042 = vlog2.f32 %v1458_v6 }
 0x6a7   :  { %v2025_v56 = vpop.eup %2024  ;;  %v1053_v31 = vmul.f32 0.6931472, %v2023_v23 }
 0x6a8   :  { %701 = vadd.xlane.f32.xlu1 %v700_v62  ;;  %v927_v32 = vmul.f32 %v2761_v42, %v2025_v56  ;;  %v1084_v15 = vmul.f32 %v1083_v17, %v2705_v58 }
 0x6a9   :  { %v1055_v14 = vmul.f32 %v2446_v47, %v1053_v31 }
 0x6aa   :  { %698 = vadd.xlane.f32.xlu0 %v697_v22  ;;  %v937_v50 = vsel %vm94_vm0, %v927_v32, 0.0  ;;  %v1085_v41 = vsel %vm94_vm0, %v1084_v15, 0.0 }
 0x6ab   :  { %v2027_v45 = vpop.eup %2026  ;;  %v1059_v3 = vsel %vm94_vm0, %v1055_v14, 0.0 }
 0x6ac   :  { %929 = vadd.xlane.f32.xlu1 %v928_v11  ;;  %v2029_v26 = vpop.eup %2028  ;;  %v1272_v39 = vmul.f32 %v2752_v46, %v2027_v45 }
 0x6ad   :  { %v2031_v10 = vpop.eup %2030  ;;  %v1271_v58 = vmul.f32 %v2740_v7, %v2029_v26 }
 0x6ae   :  { %733 = vadd.xlane.f32.xlu0 %v732_v8  ;;  %v2033_v51 = vpop.eup %2032  ;;  %v1278_v62 = vsel %vm94_vm0, %v1272_v39, 0.0  ;;  %v1412_v44 = vmul.f32 0.6931472, %v2031_v10 }
 0x6af   :  { %v2035_v4 = vpop.eup %2034  ;;  %v1274_v47 = vmul.f32 %v2761_v42, %v2033_v51  ;;  %v1275_v53 = vsel %vm94_vm0, %v1271_v58, 0.0 }
 0x6b0   :  { %935 = vadd.xlane.f32.xlu1 %v934_v29  ;;  %v2037_v27 = vpop.eup %2036  ;;  %v1410_v18 = vmul.f32 0.6931472, %v2035_v4  ;;  %v1418_v43 = vmul.f32 %v2507_v34, %v1412_v44 }
 0x6b1   :  { %v2039_v57 = vpop.eup %2038  ;;  %v1273_v63 = vmul.f32 %v2747_v30, %v2037_v27  ;;  %v1284_v22 = vsel %vm94_vm0, %v1274_v47, 0.0 }
 0x6b2   :  { %932 = vadd.xlane.f32.xlu0 %v931_v60  ;;  %v2041_v12 = vpop.eup %2040  ;;  %v1416_v2 = vmul.f32 0.6931472, %v2039_v57  ;;  %v1417_v11 = vmul.f32 %v1410_v18, %v2511_v36  ;;  %v1424_v52 = vsel %vm94_vm0, %v1418_v43, 0.0  ;;  %v2878_v18 = vld [vmem:[#allocation16_spill] sm:$0xff] }
 0x6b3   :  { %v1281_v9 = vsel %vm94_vm0, %v1273_v63, 0.0  ;;  %v1414_v19 = vmul.f32 0.6931472, %v2041_v12  ;;  %v2043_v13 = vpop.eup %2042  ;;  %v546_v12 = vmul.f32 %v2646_v59, %v2878_v18 }
 0x6b4   :  { %1057 = vadd.xlane.f32.xlu1 %v1056_v61  ;;  %v1420_v8 = vmul.f32 %v2520_v48, %v1416_v2  ;;  %v1421_v23 = vsel %vm94_vm0, %v1417_v11, 0.0  ;;  %v1460_v16 = vmul.f32 0.6931472, %v2043_v13 }
 0x6b5   :  { %v1419_v54 = vmul.f32 %v1414_v19, %v2877_v40 }
 0x6b6   :  { %938 = vadd.xlane.f32.xlu0 %v937_v50  ;;  %v1430_v34 = vsel %vm94_vm0, %v1420_v8, 0.0  ;;  %v1461_v36 = vmul.f32 %v1460_v16, %v2756_v49  ;;  %v548_v8 = vmul.f32 %v2651_v1, %v2634_v0 }
 0x6b7   :  { %v1427_v56 = vsel %vm94_vm0, %v1419_v54, 0.0 }
 0x6b8   :  { %1086 = vadd.xlane.f32.xlu1 %v1085_v41  ;;  %v1462_v29 = vsel %vm94_vm0, %v1461_v36, 0.0 }
 0x6ba   :  { %1060 = vadd.xlane.f32.xlu0 %v1059_v3 }
 0x6bc   :  { %1279 = vadd.xlane.f32.xlu1 %v1278_v62 }
 0x6be   :  { %1276 = vadd.xlane.f32.xlu0 %v1275_v53 }
 0x6c0   :  { %1285 = vadd.xlane.f32.xlu1 %v1284_v22 }
 0x6c2   :  { %1282 = vadd.xlane.f32.xlu0 %v1281_v9 }
 0x6c4   :  { %1425 = vadd.xlane.f32.xlu1 %v1424_v52 }
 0x6c6   :  { %1422 = vadd.xlane.f32.xlu0 %v1421_v23 }
 0x6c8   :  { %1431 = vadd.xlane.f32.xlu1 %v1430_v34 }
 0x6ca   :  { %1428 = vadd.xlane.f32.xlu0 %v1427_v56 }
 0x6ce   :  { %1463 = vadd.xlane.f32.xlu0 %v1462_v29 }
 0x715   :  { %v1623_v25 = vpop.xlane.xlu0 %1622 }
 0x716   :  { %v1631_v48 = vmax.f32 %v1623_v25, 1e-20 }
 0x717   :  { %v1620_v17 = vpop.xlane.xlu1 %1619 }
 0x718   :  { %2044 = vrsqrt.f32 %v1631_v48  ;;  %v1630_v31 = vmax.f32 %v1620_v17, 1e-20  ;;  %v2879_v48 = vld [vmem:[#allocation22_spill] sm:$0xff] }
 0x71a   :  { %2046 = vrsqrt.f32 %v1630_v31 }
 0x71d   :  { %v1629_v40 = vpop.xlane.xlu1 %1628 }
 0x71e   :  { %v1633_v60 = vmax.f32 %v1629_v40, 1e-20 }
 0x71f   :  { %v1626_v32 = vpop.xlane.xlu0 %1625 }
 0x720   :  { %2048 = vrsqrt.f32 %v1633_v60  ;;  %v1632_v6 = vmax.f32 %v1626_v32, 1e-20 }
 0x721   :  { %v2789_v61 = vpop.xlane.xlu1 %343 }
 0x722   :  { %2050 = vrsqrt.f32 %v1632_v6 }
 0x723   :  { %v2791_v15 = vpop.xlane.xlu0 %317 }
 0x725   :  { %v2045_v49 = vpop.eup %2044  ;;  %v538_v45 = vpop.xlane.xlu1 %537 }
 0x726   :  { %v1671_v50 = vmul.f32 %v2045_v49, %v1623_v25  ;;  %2052 = vlog2.f32 %v538_v45  ;;  %v1643_v14 = vmul.f32 %v2045_v49, %v2664_v33  ;;  %v552_v25 = vmul.f32 %v2651_v1, %v548_v8  ;;  %v2882_v8 = vld [vmem:[#allocation17_spill] sm:$0xff] }
 0x727   :  { %v2047_v26 = vpop.eup %2046  ;;  %v535_v10 = vpop.xlane.xlu0 %534 }
 0x728   :  { %v2794_v41 = vmul.f32 %v2045_v49, %v1671_v50  ;;  %v1670_v39 = vmul.f32 %v2047_v26, %v1620_v17  ;;  %2054 = vlog2.f32 %v535_v10  ;;  %v1648_v4 = vmul.f32 1.442695, %v1643_v14  ;;  %v2880_v10 = vld [vmem:[#allocation19_spill] sm:$0xff] }
 0x729   :  { %v544_v51 = vpop.xlane.xlu1 %543  ;;  %v1642_v3 = vmul.f32 %v2047_v26, %v2668_v20 }
 0x72a   :  { %v2797_v58 = vmul.f32 %v2047_v26, %v1670_v39  ;;  %2056 = vlog2.f32 %v544_v51 }
 0x72b   :  { %v541_v27 = vpop.xlane.xlu0 %540  ;;  %2058 = vpow2.f32 %v1648_v4  ;;  %v1646_v62 = vmul.f32 1.442695, %v1642_v3 }
 0x72c   :  { %2060 = vlog2.f32 %v541_v27 }
 0x72d   :  { %v2049_v47 = vpop.eup %2048  ;;  %v696_v44 = vpop.xlane.xlu1 %695  ;;  %2062 = vpow2.f32 %v1646_v62 }
 0x72e   :  { %v1673_v33 = vmul.f32 %v2049_v47, %v1629_v40  ;;  %v1645_v57 = vmul.f32 %v2049_v47, %v2686_v35  ;;  %v550_v35 = vmul.f32 %v2646_v59, %v546_v12 }
 0x72f   :  { %v2051_v53 = vpop.eup %2050  ;;  %v693_v63 = vpop.xlane.xlu0 %692 }
 0x730   :  { %v2802_v22 = vmul.f32 %v2049_v47, %v1673_v33  ;;  %v1672_v20 = vmul.f32 %v2051_v53, %v1626_v32  ;;  %v1652_v2 = vmul.f32 1.442695, %v1645_v57  ;;  %v1644_v9 = vmul.f32 %v2051_v53, %v2692_v21 }
 0x731   :  { %v702_v43 = vpop.xlane.xlu1 %701  ;;  %v703_v45 = vadd.f32 %v696_v44, %v693_v63  ;;  %v2881_v63 = vld [vmem:[#allocation15_spill] sm:$0xff] }
 0x732   :  { %v2805_v11 = vmul.f32 %v2051_v53, %v1672_v20  ;;  %2064 = vpow2.f32 %v1652_v2  ;;  %v1650_v52 = vmul.f32 1.442695, %v1644_v9  ;;  %v319_v18 = vadd.f32 %v2791_v15, %v2881_v63 }
 0x733   :  { %v2053_v19 = vpop.eup %2052  ;;  %v699_v13 = vpop.xlane.xlu0 %698 }
 0x734   :  { %v556_v23 = vmul.f32 0.6931472, %v2053_v19  ;;  %2066 = vpow2.f32 %v1650_v52  ;;  %v704_v39 = vadd.f32 %v703_v45, %v699_v13 }
 0x735   :  { %v2055_v54 = vpop.eup %2054  ;;  %v930_v16 = vpop.xlane.xlu1 %929 }
 0x736   :  { %v562_v34 = vsub.f32 %v556_v23, %v550_v35  ;;  %v554_v56 = vmul.f32 0.6931472, %v2055_v54  ;;  %2068 = vlog2.f32 %v930_v16  ;;  %v705_v47 = vadd.f32 %v704_v39, %v702_v43 }
 0x737   :  { %v2057_v36 = vpop.eup %2056  ;;  %v2810_v21 = vpop.xlane.xlu0 %733  ;;  %v320_v54 = vrot.slane %v319_v18, 4 }
 0x738   :  { %v2059_v29 = vpop.eup %2058  ;;  %v561_v17 = vsub.f32 %v554_v56, %v2879_v48  ;;  %v560_v31 = vmul.f32 0.6931472, %v2057_v36  ;;  %v706_v43 = vrot.slane %v705_v47, 4  ;;  %v943_v48 = vmul.f32 %v2696_v55, %v2595_v5 }
 0x739   :  { %v2061_v59 = vpop.eup %2060  ;;  %v936_v40 = vpop.xlane.xlu1 %935  ;;  %v1655_v0 = vmul.f32 %v2752_v46, %v2059_v29  ;;  %v345_v5 = vmul.f32 0.25, %v2789_v61 }
 0x73a   :  { %v2063_v60 = vpop.eup %2062  ;;  %v565_v32 = vadd.f32 %v562_v34, %v561_v17  ;;  %v564_v6 = vsub.f32 %v560_v31, %v552_v25  ;;  %v558_v49 = vmul.f32 0.6931472, %v2061_v59  ;;  %2070 = vlog2.f32 %v936_v40  ;;  %v2883_v40 = vld [vmem:[#allocation20_spill] sm:$0xff] }
 0x73b   :  { %v933_v50 = vpop.xlane.xlu0 %932  ;;  %v1661_v14 = vsel %vm94_vm0, %v1655_v0, 0.0  ;;  %v1654_v26 = vmul.f32 %v2740_v7, %v2063_v60  ;;  %v707_v36 = vadd.f32 %v706_v43, %v705_v47  ;;  %v321_v59 = vadd.f32 %v320_v54, %v319_v18 }
 0x73c   :  { %v563_v1 = vsub.f32 %v558_v49, %v2880_v10  ;;  %2072 = vlog2.f32 %v933_v50  ;;  %1662 = vadd.xlane.f32.xlu0 %v1661_v14 }
 0x73d   :  { %v1658_v51 = vsel %vm94_vm0, %v1654_v26, 0.0  ;;  %v1058_v4 = vpop.xlane.xlu1 %1057  ;;  %v708_v14 = vrot.slane %v707_v36, 2  ;;  %v947_v26 = vmul.f32 %v2696_v55, %v943_v48 }
 0x73e   :  { %v566_v46 = vadd.f32 %v565_v32, %v563_v1  ;;  %1659 = vadd.xlane.f32.xlu1 %v1658_v51  ;;  %v322_v51 = vrot.slane %v321_v59, 2 }
 0x73f   :  { %v939_v3 = vpop.xlane.xlu0 %938  ;;  %v2065_v27 = vpop.eup %2064  ;;  %v709_v47 = vadd.f32 %v708_v14, %v707_v36 }
 0x740   :  { %v567_v62 = vadd.f32 %v566_v46, %v564_v6  ;;  %2074 = vlog2.f32 %v939_v3  ;;  %v1657_v33 = vmul.f32 %v2761_v42, %v2065_v27  ;;  %v2884_v6 = vld [vmem:[#allocation18_spill] sm:$0xff]  ;;  %v323_v63 = vadd.f32 %v322_v51, %v321_v59 }
 0x741   :  { %v2819_v44 = vpop.xlane.xlu1 %1086  ;;  %v2067_v7 = vpop.eup %2066 }
 0x742   :  { %v568_v57 = vrot.slane %v567_v62, 4  ;;  %v1667_v20 = vsel %vm94_vm0, %v1657_v33, 0.0  ;;  %v1656_v2 = vmul.f32 %v2747_v30, %v2067_v7 }
 0x743   :  { %v2069_v53 = vpop.eup %2068  ;;  %v1061_v12 = vpop.xlane.xlu0 %1060  ;;  %1668 = vadd.xlane.f32.xlu0 %v1667_v20 }
 0x744   :  { %v569_v9 = vadd.f32 %v568_v57, %v567_v62  ;;  %v949_v19 = vmul.f32 0.6931472, %v2069_v53  ;;  %v1062_v13 = vadd.f32 %v1061_v12, %v1058_v4  ;;  %v1664_v52 = vsel %vm94_vm0, %v1656_v2, 0.0 }
 0x745   :  { %v1280_v35 = vpop.xlane.xlu1 %1279  ;;  %1665 = vadd.xlane.f32.xlu1 %v1664_v52  ;;  %v1290_v53 = vmul.f32 %v2721_v37, %v2672_v24  ;;  %v324_v24 = vrot.slane %v323_v63, 1 }
 0x746   :  { %v570_v42 = vrot.slane %v569_v9, 2  ;;  %v956_v23 = vsub.f32 %v949_v19, %v2882_v8  ;;  %v1063_v16 = vrot.slane %v1062_v13, 4  ;;  %2076 = vlog2.f32 %v1280_v35 }
 0x747   :  { %v1277_v15 = vpop.xlane.xlu0 %1276  ;;  %v2071_v34 = vpop.eup %2070  ;;  %v710_v19 = vrot.slane %v709_v47, 1 }
 0x748   :  { %v571_v56 = vadd.f32 %v570_v42, %v569_v9  ;;  %2078 = vlog2.f32 %v1277_v15  ;;  %v953_v29 = vmul.f32 0.6931472, %v2071_v34  ;;  %v1064_v60 = vadd.f32 %v1063_v16, %v1062_v13  ;;  %v2885_v16 = vld [vmem:[#allocation23_spill] sm:$0xff] }
 0x749   :  { %v2073_v30 = vpop.eup %2072  ;;  %v1286_v25 = vpop.xlane.xlu1 %1285  ;;  %v1289_v9 = vmul.f32 %v2727_v28, %v2678_v38  ;;  %v711_v48 = vadd.f32 %v710_v19, %v709_v47 }
 0x74a   :  { %v572_v17 = vrot.slane %v571_v56, 1  ;;  %v951_v31 = vmul.f32 0.6931472, %v2073_v30  ;;  %2080 = vlog2.f32 %v1286_v25  ;;  %v958_v0 = vsub.f32 %v953_v29, %v2883_v40 }
 0x74b   :  { %v1283_v32 = vpop.xlane.xlu0 %1282  ;;  %v1065_v4 = vrot.slane %v1064_v60, 2  ;;  %v1293_v38 = vmul.f32 %v2727_v28, %v1289_v9 }
 0x74c   :  { %v957_v49 = vsub.f32 %v951_v31, %v2884_v6  ;;  %2082 = vlog2.f32 %v1283_v32  ;;  %v573_v45 = vadd.f32 %v572_v17, %v571_v56  ;;  %v2886_v56 = vld [vmem:[#allocation24_spill] sm:$0xff] }
 0x74d   :  { %v2075_v50 = vpop.eup %2074  ;;  %v1426_v46 = vpop.xlane.xlu1 %1425  ;;  %v1066_v55 = vadd.f32 %v1065_v4, %v1064_v60 }
 0x74e   :  { %v960_v10 = vadd.f32 %v957_v49, %v956_v23  ;;  %v955_v1 = vmul.f32 0.6931472, %v2075_v50  ;;  %v574_v39 = vmul.f32 0.03125, %v573_v45  ;;  %v1294_v23 = vmul.f32 %v2721_v37, %v1290_v53 }
 0x74f   :  { %v1423_v3 = vpop.xlane.xlu0 %1422  ;;  %v1067_v54 = vrot.slane %v1066_v55, 1  ;;  %v712_v49 = vsub.f32 0.0, %v711_v48 }
 0x750   :  { %v959_v27 = vsub.f32 %v955_v1, %v947_v26  ;;  %v961_v62 = vadd.f32 %v960_v10, %v958_v0  ;;  %v575_v33 = vadd.f32 %v574_v39, %v345_v5  ;;  %v1433_v57 = vadd.f32 %v1426_v46, %v1423_v3 }
 0x751   :  { %v1432_v43 = vpop.xlane.xlu1 %1431  ;;  %v325_v0 = vadd.f32 %v324_v24, %v323_v63  ;;  %v1068_v60 = vadd.f32 %v1067_v54, %v1066_v55  ;;  %v735_v39 = vmul.f32 0.25, %v2810_v21  ;;  %v713_v51 = vmul.f32 0.0078125, %v712_v49 }
 0x752   :  { %v962_v7 = vadd.f32 %v961_v62, %v959_v27 }
 0x753   :  { %v1429_v18 = vpop.xlane.xlu0 %1428  ;;  %v2077_v12 = vpop.eup %2076  ;;  %v326_v26 = vsub.f32 0.0, %v325_v0  ;;  %v1069_v10 = vsub.f32 0.0, %v1068_v60 }
 0x754   :  { %v963_v20 = vrot.slane %v962_v7, 4  ;;  %v1434_v2 = vadd.f32 %v1433_v57, %v1429_v18  ;;  %v1298_v13 = vmul.f32 0.6931472, %v2077_v12 }
 0x755   :  { %v2079_v61 = vpop.eup %2078  ;;  %v327_v27 = vmul.f32 0.015625, %v326_v26  ;;  %v1070_v62 = vmul.f32 0.015625, %v1069_v10 }
 0x756   :  { %v964_v52 = vadd.f32 %v963_v20, %v962_v7  ;;  %v1296_v35 = vmul.f32 0.6931472, %v2079_v61  ;;  %v1435_v42 = vadd.f32 %v1434_v2, %v1432_v43  ;;  %v1304_v15 = vsub.f32 %v1298_v13, %v2885_v16 }
 0x757   :  { %v2081_v8 = vpop.eup %2080  ;;  %v971_v53 = vadd.f32 %v713_v51, %v327_v27 }
 0x758   :  { %v965_v34 = vrot.slane %v964_v52, 2  ;;  %v1303_v30 = vsub.f32 %v1296_v35, %v2886_v56  ;;  %v1302_v36 = vmul.f32 0.6931472, %v2081_v8  ;;  %v1436_v29 = vrot.slane %v1435_v42, 4 }
 0x759   :  { %v2083_v25 = vpop.eup %2082  ;;  %v1318_v18 = vadd.f32 %v1070_v62, %v971_v53 }
 0x75a   :  { %v966_v17 = vadd.f32 %v965_v34, %v964_v52  ;;  %v1307_v31 = vadd.f32 %v1304_v15, %v1303_v30  ;;  %v1306_v59 = vsub.f32 %v1302_v36, %v1294_v23  ;;  %v1300_v40 = vmul.f32 0.6931472, %v2083_v25 }
 0x75b   :  { %v1437_v37 = vadd.f32 %v1436_v29, %v1435_v42 }
 0x75c   :  { %v967_v32 = vrot.slane %v966_v17, 1  ;;  %v1305_v6 = vsub.f32 %v1300_v40, %v1293_v38 }
 0x75d   :  { %v1438_v45 = vrot.slane %v1437_v37, 2 }
 0x75e   :  { %v968_v50 = vadd.f32 %v967_v32, %v966_v17  ;;  %v1308_v14 = vadd.f32 %v1307_v31, %v1305_v6 }
 0x75f   :  { %v1439_v1 = vadd.f32 %v1438_v45, %v1437_v37 }
 0x760   :  { %v1309_v28 = vadd.f32 %v1308_v14, %v1306_v59  ;;  %v969_v5 = vmul.f32 0.03125, %v968_v50 }
 0x761   :  { %v1440_v4 = vrot.slane %v1439_v1, 1 }
 0x762   :  { %v1310_v46 = vrot.slane %v1309_v28, 4  ;;  %v970_v3 = vadd.f32 %v969_v5, %v735_v39 }
 0x763   :  { %v1441_v47 = vadd.f32 %v1440_v4, %v1439_v1 }
 0x764   :  { %v1311_v7 = vadd.f32 %v1310_v46, %v1309_v28  ;;  %v972_v57 = vadd.f32 %v970_v3, %v575_v33 }
 0x765   :  { %v1442_v63 = vsub.f32 0.0, %v1441_v47 }
 0x766   :  { %v1312_v55 = vrot.slane %v1311_v7, 2 }
 0x767   :  { %v1443_v12 = vmul.f32 0.0078125, %v1442_v63 }
 0x768   :  { %v1313_v20 = vadd.f32 %v1312_v55, %v1311_v7 }
 0x769   :  { %v1701_v2 = vadd.f32 %v1443_v12, %v1318_v18 }
 0x76a   :  { %v1314_v21 = vrot.slane %v1313_v20, 1 }
 0x76b   :  { %1704 = vst.msk [vmem:[#allocation8] sm:$0x1] %vm1703_vm2, %v1701_v2 }
 0x76c   :  { %v1315_v61 = vadd.f32 %v1314_v21, %v1313_v20 }
 0x76d   :  { %2167 = shalt.err (!%p2164_p5)
}
 0x76e   :  { %1715 = dma.vmem_to_hbm [thread:$0]  %s1713_s10, 16, %s2862_s6, [#allocation4]   ;;  %v1088_v33 = vmul.f32 0.25, %v2819_v44  ;;  %v1316_v9 = vmul.f32 0.03125, %v1315_v61  ;;  %v1464_v43 = vpop.xlane.xlu0 %1463 }
 0x76f   :  { %s2210_s6 = smov [#allocation9]  }
 0x770   :  { %v1317_v19 = vadd.f32 %v1316_v9, %v1088_v33  ;;  %s1722_s15 = sshll.u32 %s2210_s6, 4  ;;  %s1723_s15 = int_to_ptr.vmem [resolvable:$true] %s1722_s15 }
 0x771   :  { %s2176_s4 = scalar_lea.vmem %s1723_s15, 16  ;;  %s2180_s16 = scalar_lea.vmem %s1723_s15, 32 }
 0x772   :  { %v1319_v13 = vadd.f32 %v1317_v19, %v972_v57  ;;  %p2177_p6 = scmp.ne.s32.totalorder %s1723_s15, %s2176_s4  ;;  %p2181_p7 = scmp.lt.s32.totalorder %s1723_s15, %s1723_s15 }
 0x773   :  { %p2182_p8 = scmp.lt.s32.totalorder %s2180_s16, %s2176_s4 }
 0x775   :  { %p2183_p9 = por %p2182_p8, %p2181_p7 }
 0x777   :  { %p2184_p10 = pnand %p2183_p9, %p2177_p6 }
 0x7c5   :  { %v1663_v52 = vpop.xlane.xlu0 %1662 }
 0x7c6   :  { %2084 = vlog2.f32 %v1663_v52 }
 0x7c7   :  { %v1660_v35 = vpop.xlane.xlu1 %1659 }
 0x7c8   :  { %2086 = vlog2.f32 %v1660_v35 }
 0x7cc   :  { %v1669_v42 = vpop.xlane.xlu0 %1668 }
 0x7cd   :  { %2088 = vlog2.f32 %v1669_v42 }
 0x7ce   :  { %v1666_v8 = vpop.xlane.xlu1 %1665 }
 0x7cf   :  { %2090 = vlog2.f32 %v1666_v8 }
 0x7d3   :  { %v2085_v23 = vpop.eup %2084 }
 0x7d4   :  { %v1681_v24 = vmul.f32 0.6931472, %v2085_v23 }
 0x7d5   :  { %v2087_v54 = vpop.eup %2086 }
 0x7d6   :  { %v1679_v16 = vmul.f32 0.6931472, %v2087_v54  ;;  %v1687_v15 = vsub.f32 %v1681_v24, %v2794_v41  ;;  %v1465_v41 = vmul.f32 0.25, %v1464_v43 }
 0x7d8   :  { %v1686_v44 = vsub.f32 %v1679_v16, %v2797_v58 }
 0x7da   :  { %v1690_v34 = vadd.f32 %v1687_v15, %v1686_v44  ;;  %v2089_v56 = vpop.eup %2088 }
 0x7db   :  { %v1685_v36 = vmul.f32 0.6931472, %v2089_v56 }
 0x7dc   :  { %v2091_v30 = vpop.eup %2090 }
 0x7dd   :  { %v1683_v29 = vmul.f32 0.6931472, %v2091_v30  ;;  %v1689_v38 = vsub.f32 %v1685_v36, %v2802_v22 }
 0x7df   :  { %v1688_v25 = vsub.f32 %v1683_v29, %v2805_v11 }
 0x7e1   :  { %v1691_v48 = vadd.f32 %v1690_v34, %v1688_v25 }
 0x7e3   :  { %v1692_v17 = vadd.f32 %v1691_v48, %v1689_v38 }
 0x7e5   :  { %v1693_v31 = vrot.slane %v1692_v17, 4 }
 0x7e7   :  { %v1694_v59 = vadd.f32 %v1693_v31, %v1692_v17 }
 0x7e9   :  { %v1695_v40 = vrot.slane %v1694_v59, 2 }
 0x7eb   :  { %v1696_v0 = vadd.f32 %v1695_v40, %v1694_v59 }
 0x7ed   :  { %v1697_v60 = vrot.slane %v1696_v0, 1 }
 0x7ef   :  { %v1698_v37 = vadd.f32 %v1697_v60, %v1696_v0 }
 0x7f1   :  { %v1699_v32 = vmul.f32 0.03125, %v1698_v37 }
 0x7f3   :  { %v1700_v58 = vadd.f32 %v1699_v32, %v1465_v41 }
 0x7f5   :  { %v1702_v6 = vadd.f32 %v1700_v58, %v1319_v13 }
 0x7f7   :  { %1705 = vst.msk [vmem:[#allocation9] sm:$0x1] %vm1703_vm2, %v1702_v6 }
 0x7f8   :  { %2187 = shalt.err (!%p2184_p10)
}
 0x7f9   :  { %1725 = dma.vmem_to_hbm [thread:$0]  %s1723_s15, 16, %s2863_s7, [#allocation10]  }
 0x7fa   :  { %2200 = dma.done.wait [#allocation4], 16  }
 0x7fb   :  { %2201 = vsyncadd [#allocation4], 4294967280 }
 0x7fc   :  { %2202 = dma.done.wait [#allocation10], 16  }
 0x7fd   :  { %2203 = vsyncadd [#allocation10], 4294967280 }
 0x7fe   :  { %1732 = vsyncpa [#allocation3], 1 }
 0x7ff   :  { %1733 = vsyncpa [#allocation6], 1 }
 0x800   :  { %1734 = vsyncpa [#allocation4], 1 }
 0x801   :  { %1735 = vsyncpa [#allocation10], 1 }

</bundles_post_ra>
